<compile_context>
chip_gen: v7x
topology: tpu7x:2x2x1
jax: 0.10.0
libtpu: 0.0.40
codegen_flags: <defaults>
</compile_context>

<pallas_src>
import functools
import numpy as np
import jax
import jax.numpy as jnp
from jax import lax
from jax.experimental import pallas as pl
from jax.experimental.pallas import tpu as pltpu

EPSILON_F = 1e-12  # eps in g(F) = F^T F / (||F^T F||_F + eps)


def _elu(x):
    # F.elu (alpha=1).  exp() only sees the clamped (<=0) branch, so the
    # unselected branch can never overflow.
    return jnp.where(x > 0, x, jnp.exp(jnp.minimum(x, 0.0)) - 1.0)


# ----------------------------- Pallas kernel ------------------------------- #

def _mgnni_stack_kernel(
    x_ref, apow_ref, gfb_ref,
    att_w1_ref, att_b1_ref, att_w2_ref,
    fc0_w_ref, fc0_b_ref, res_w_ref, res_b_ref,
    fcs_w_ref, fcs_b_ref,
    bn_scale_ref, bn_shift_ref,
    fout_w_ref, fout_b_ref,
    out_ref,
    *, num_branches, m, threshold, max_iter, check_every):
    K = num_branches
    X = x_ref[...]                         # (m, N) features
    gFb = gfb_ref[...]                     # (K*m, K*m) block-diag, gamma pre-folded
    thr_sq = float(threshold) * float(threshold)

    # --- prologue: loop-invariant work hoisted before the long serial loop ---
    R = jnp.dot(res_w_ref[...], X, preferred_element_type=jnp.float32) + res_b_ref[...]
    Xstack = jnp.concatenate([X] * K, axis=0)            # (K*m, N)

    def joint_f(Zs):
        # Interleaved fixed-point map for all K branches:
        #   one block-diagonal gF matmul (MXU M = K*m instead of m), then K
        #   independent propagate matmuls issued back-to-back (hides drain).
        P = jnp.dot(gFb, Zs, preferred_element_type=jnp.float32)       # (K*m, N)
        Qs = []
        for idx in range(K):
            Pk = P[idx * m:(idx + 1) * m]
            # NT dot with the precomputed power A^k:  Pk @ (A^k)^T == Pk @ (A^T)^k,
            # so no adjacency transpose is ever materialized and branch k needs
            # exactly one matmul per iteration regardless of k.
            Qs.append(lax.dot_general(Pk, apow_ref[idx], (((1,), (1,)), ((), ())),
                                      preferred_element_type=jnp.float32))
        return jnp.concatenate(Qs, axis=0) + Xstack

    def cond_fn(carry):
        _, nstep, diff_sq = carry
        return jnp.logical_and(nstep < max_iter, diff_sq >= thr_sq)

    def body_fn(carry):
        # `check_every`-way partial unroll; the cross-lane Frobenius reduce that
        # feeds the loop condition is amortized over check_every iterations.
        Zs, nstep, _ = carry
        for _ in range(check_every - 1):
            Zs = joint_f(Zs)
        Z_new = joint_f(Zs)
        d = Z_new - Zs
        diff_sq = None
        for idx in range(K):                 # worst per-branch ||dZ_k||_F^2
            dk = d[idx * m:(idx + 1) * m]
            s = jnp.sum(dk * dk)
            diff_sq = s if diff_sq is None else jnp.maximum(diff_sq, s)
        return Z_new, nstep + check_every, diff_sq

    # fwd_solver with z_init = 0:  f(0) = X exactly (g(F) @ 0 == 0), joint over K.
    Zs, _, _ = lax.while_loop(
        cond_fn, body_fn, (Xstack, jnp.int32(0), jnp.float32(jnp.inf)))

    # --- attention: w_k = W2 @ tanh(W1 @ Z_k + b1), softmax over K per node ---
    att_w1 = att_w1_ref[...]   # (hatt, m)
    att_b1 = att_b1_ref[...]   # (hatt, 1)
    att_w2 = att_w2_ref[...]   # (hatt, 1)
    z_list, w_list = [], []
    for idx in range(K):
        Zk = Zs[idx * m:(idx + 1) * m]
        h = jnp.tanh(jnp.dot(att_w1, Zk, preferred_element_type=jnp.float32) + att_b1)
        w_list.append(jnp.sum(h * att_w2, axis=0, keepdims=True))    # (1, N)
        z_list.append(Zk)

    w_max = w_list[0]
    for w in w_list[1:]:
        w_max = jnp.maximum(w_max, w)
    e_list = [jnp.exp(w - w_max) for w in w_list]
    denom = e_list[0]
    for e in e_list[1:]:
        denom = denom + e
    inv_denom = 1.0 / denom                                   # (1, N)
    Zatt = z_list[0] * (e_list[0] * inv_denom)
    for Zk, e in zip(z_list[1:], e_list[1:]):
        Zatt = Zatt + Zk * (e * inv_denom)                    # (m, N)

    # --- MLP head (feature-major): fc0 + residual-in + bn0 + elu --------------
    H = jnp.dot(fc0_w_ref[...], Zatt, preferred_element_type=jnp.float32) + fc0_b_ref[...]
    H = H + R
    H = H * bn_scale_ref[0] + bn_shift_ref[0]
    H = _elu(H)

    num_layers = fcs_w_ref.shape[0]
    for i in range(num_layers):
        G = jnp.dot(fcs_w_ref[i], H, preferred_element_type=jnp.float32) + fcs_b_ref[i]
        G = G + H                                             # residual
        G = G * bn_scale_ref[i + 1] + bn_shift_ref[i + 1]     # bns[i], eval mode
        H = _elu(G)

    out = jnp.dot(fout_w_ref[...], H, preferred_element_type=jnp.float32) + fout_b_ref[...]
    out_ref[...] = out                                        # (m_y, N), lane-dense


# ------------------------------ JAX wrapper -------------------------------- #

def mgnni_m_att_stack_forward(X, adj, params, *, ks, gamma, threshold, max_iter,
                              check_every=8, bn_eps=1e-5):
    """X: (m, N) node features; adj: (N, N). Returns (N, m_y) like the module."""
    m, n_nodes = X.shape
    K = len(ks)

    # g(F) = F^T F / (||F^T F||_F + eps), per branch; gamma pre-folded; assembled
    # into one block-diagonal matrix so the kernel's gF step is a single matmul.
    F = params["F"]                                          # (K, m, m)
    FtF = jnp.einsum("kij,kil->kjl", F, F)
    fro = jnp.sqrt(jnp.sum(FtF * FtF, axis=(1, 2), keepdims=True))
    gF = (float(gamma) * FtF) / (fro + EPSILON_F)            # (K, m, m)
    gF_block = jnp.zeros((K * m, K * m), jnp.float32)
    for idx in range(K):
        gF_block = gF_block.at[idx * m:(idx + 1) * m,
                               idx * m:(idx + 1) * m].set(gF[idx])

    # Adjacency powers A^k: collapses branch-k's per-iteration serial chain of k
    # matmuls into one NT dot inside the kernel (P @ (A^k)^T == P @ (A^T)^k).
    apows = []
    for k in ks:
        Ap = adj
        for _ in range(int(k) - 1):
            Ap = jnp.dot(Ap, adj, preferred_element_type=jnp.float32)
        apows.append(Ap.astype(jnp.float32))
    Apow = jnp.stack(apows, axis=0)                          # (K, N, N)

    # Fold eval-mode BatchNorm1d into per-feature scale/shift.
    inv_std = 1.0 / jnp.sqrt(params["bn_var"] + bn_eps)      # (L+1, nhid)
    bn_scale = (params["bn_w"] * inv_std)[..., None]         # (L+1, nhid, 1)
    bn_shift = (params["bn_b"] - params["bn_mean"] * params["bn_w"] * inv_std)[..., None]

    att_w1, att_b1, att_w2 = params["att_w1"], params["att_b1"], params["att_w2"]
    fc0_w, fc0_b = params["fc0_w"], params["fc0_b"]
    res_w, res_b = params["res_w"], params["res_b"]
    fcs_w, fcs_b = params["fcs_w"], params["fcs_b"]
    fout_w, fout_b = params["fout_w"], params["fout_b"]

    hatt = att_w1.shape[0]
    nhid = fc0_w.shape[0]
    L = fcs_w.shape[0]
    m_y = fout_w.shape[0]

    inputs = (X, Apow, gF_block, att_w1, att_b1, att_w2, fc0_w, fc0_b, res_w, res_b,
              fcs_w, fcs_b, bn_scale, bn_shift, fout_w, fout_b)

    # Advisory cost hint: the kernel runs far longer than its I/O suggests
    # (serial fixed-point iterations), so tell XLA how expensive it really is.
    flops_fp = max_iter * (2 * (K * m) * (K * m) * n_nodes
                           + K * 2 * m * n_nodes * n_nodes)
    flops_head = (2 * K * hatt * m * n_nodes
                  + 2 * 2 * nhid * m * n_nodes
                  + 2 * L * nhid * nhid * n_nodes
                  + 2 * m_y * nhid * n_nodes)
    transcendentals = K * (hatt + 1) * n_nodes + (L + 1) * nhid * n_nodes
    total_in_bytes = sum(int(np.prod(a.shape)) * 4 for a in inputs)
    bytes_accessed = total_in_bytes + m_y * n_nodes * 4

    # Raise the scoped-VMEM limit explicitly (defaults 16/32/32 MiB are well below
    # physical); clamp below v7x's 64 MiB physical VMEM per TensorCore.
    vmem_limit = int(min(max(3 * total_in_bytes + (4 << 20), 32 << 20), 60 << 20))

    kernel = functools.partial(
        _mgnni_stack_kernel, num_branches=K, m=int(m),
        threshold=float(threshold), max_iter=int(max_iter),
        check_every=int(check_every))

    vmem = pl.BlockSpec(memory_space=pltpu.MemorySpace.VMEM)
    out_t = pl.pallas_call(
        kernel,
        out_shape=jax.ShapeDtypeStruct((m_y, n_nodes), jnp.float32),
        in_specs=[vmem] * len(inputs),
        out_specs=vmem,
        compiler_params=pltpu.CompilerParams(vmem_limit_bytes=vmem_limit),
        cost_estimate=pl.CostEstimate(flops=int(flops_fp + flops_head),
                                      transcendentals=int(transcendentals),
                                      bytes_accessed=int(bytes_accessed)),
    )(*inputs)
    return out_t.T                                           # (N, m_y)


# ------------------------ synthetic parameter init ------------------------- #

def _uniform(key, shape, bound):
    return jax.random.uniform(key, shape, jnp.float32, -bound, bound)


def _xavier(key, shape):
    bound = float(np.sqrt(6.0 / (shape[-2] + shape[-1])))
    return jax.random.uniform(key, shape, jnp.float32, -bound, bound)


# ----------------------------------- main ----------------------------------- #

if __name__ == "__main__":
    m, m_y, nhid, n_nodes = 16, 8, 32, 128
    hatt = 16                 # Attention hidden size (module default)
    num_layers = 2
    ks = (1, 2)
    gamma = 0.8
    threshold = 1e-5
    max_iter = 300

    key = jax.random.PRNGKey(0)
    keys = iter(jax.random.split(key, 24))
    nk = lambda: next(keys)

    # Node features, feature-major (m, N) like the PyTorch module expects.
    X = jax.random.normal(nk(), (m, n_nodes), jnp.float32)

    # Symmetric-normalized adjacency with self loops (dense stand-in for sparse adj).
    raw = (jax.random.uniform(nk(), (n_nodes, n_nodes)) < 0.08).astype(jnp.float32)
    raw = jnp.minimum(raw + raw.T + jnp.eye(n_nodes, dtype=jnp.float32), 1.0)
    d_inv_sqrt = 1.0 / jnp.sqrt(raw.sum(axis=1))
    adj = raw * d_inv_sqrt[:, None] * d_inv_sqrt[None, :]

    K = len(ks)
    params = dict(
        F=_xavier(nk(), (K, m, m)),                                   # MGNNI_m_iter.F
        att_w1=_uniform(nk(), (hatt, m), 1.0 / np.sqrt(m)),           # Attention Linear(m, 16)
        att_b1=_uniform(nk(), (hatt, 1), 1.0 / np.sqrt(m)),
        att_w2=_uniform(nk(), (hatt, 1), 1.0 / np.sqrt(hatt)),        # Linear(16, 1, bias=False).weight.T
        fc0_w=_uniform(nk(), (nhid, m), 1.0 / np.sqrt(m)),
        fc0_b=_uniform(nk(), (nhid, 1), 1.0 / np.sqrt(m)),
        res_w=_uniform(nk(), (nhid, m), 1.0 / np.sqrt(m)),
        res_b=_uniform(nk(), (nhid, 1), 1.0 / np.sqrt(m)),
        fcs_w=_uniform(nk(), (num_layers, nhid, nhid), 1.0 / np.sqrt(nhid)),
        fcs_b=_uniform(nk(), (num_layers, nhid, 1), 1.0 / np.sqrt(nhid)),
        bn_w=1.0 + 0.1 * jax.random.normal(nk(), (num_layers + 1, nhid), jnp.float32),
        bn_b=0.1 * jax.random.normal(nk(), (num_layers + 1, nhid), jnp.float32),
        bn_mean=0.1 * jax.random.normal(nk(), (num_layers + 1, nhid), jnp.float32),
        bn_var=1.0 + 0.1 * jax.random.uniform(nk(), (num_layers + 1, nhid), jnp.float32),
        fout_w=_uniform(nk(), (m_y, nhid), 1.0 / np.sqrt(nhid)),
        fout_b=_uniform(nk(), (m_y, 1), 1.0 / np.sqrt(nhid)),
    )

    fwd = jax.jit(functools.partial(
        mgnni_m_att_stack_forward, ks=ks, gamma=gamma,
        threshold=threshold, max_iter=max_iter, check_every=8))

    out = jax.block_until_ready(fwd(X, adj, params))
    assert out.shape == (n_nodes, m_y), out.shape
    assert bool(jnp.all(jnp.isfinite(out)))
    print("KERNEL_OK")
</pallas_src>

<mosaic_0001>
module attributes {stable_mosaic.version = 11 : i64} {
  func.func @_mgnni_stack_kernel(%arg0: memref<16x128xf32, #tpu.memory_space<vmem>>, %arg1: memref<2x128x128xf32, #tpu.memory_space<vmem>>, %arg2: memref<32x32xf32, #tpu.memory_space<vmem>>, %arg3: memref<16x16xf32, #tpu.memory_space<vmem>>, %arg4: memref<16x1xf32, #tpu.memory_space<vmem>>, %arg5: memref<16x1xf32, #tpu.memory_space<vmem>>, %arg6: memref<32x16xf32, #tpu.memory_space<vmem>>, %arg7: memref<32x1xf32, #tpu.memory_space<vmem>>, %arg8: memref<32x16xf32, #tpu.memory_space<vmem>>, %arg9: memref<32x1xf32, #tpu.memory_space<vmem>>, %arg10: memref<2x32x32xf32, #tpu.memory_space<vmem>>, %arg11: memref<2x32x1xf32, #tpu.memory_space<vmem>>, %arg12: memref<3x32x1xf32, #tpu.memory_space<vmem>>, %arg13: memref<3x32x1xf32, #tpu.memory_space<vmem>>, %arg14: memref<8x32xf32, #tpu.memory_space<vmem>>, %arg15: memref<8x1xf32, #tpu.memory_space<vmem>>, %arg16: memref<8x128xf32, #tpu.memory_space<vmem>>) attributes {dimension_semantics = [], scalar_prefetch = 0 : i64, scratch_operands = 0 : i64, tpu.core_type = #tpu.core_type<tc>} {
    %c0 = arith.constant 0 : index
    %c0_0 = arith.constant 0 : index
    %0 = vector.load %arg0[%c0, %c0_0] : memref<16x128xf32, #tpu.memory_space<vmem>>, vector<16x128xf32>
    %c0_1 = arith.constant 0 : index
    %c0_2 = arith.constant 0 : index
    %1 = vector.load %arg2[%c0_1, %c0_2] : memref<32x32xf32, #tpu.memory_space<vmem>>, vector<32x32xf32>
    %c0_3 = arith.constant 0 : index
    %c0_4 = arith.constant 0 : index
    %2 = vector.load %arg8[%c0_3, %c0_4] : memref<32x16xf32, #tpu.memory_space<vmem>>, vector<32x16xf32>
    %cst = arith.constant dense<0.000000e+00> : vector<32x128xf32>
    %3 = tpu.matmul %2, %0, %cst {dimension_numbers = #tpu.dot_dimension_numbers<[1], [0], [0], [1], [0, 0, 1, 1], [], []>} : vector<32x16xf32>, vector<16x128xf32>, vector<32x128xf32> -> vector<32x128xf32>
    %c0_5 = arith.constant 0 : index
    %c0_6 = arith.constant 0 : index
    %4 = vector.load %arg9[%c0_5, %c0_6] : memref<32x1xf32, #tpu.memory_space<vmem>>, vector<32x1xf32>
    %5 = vector.broadcast %4 : vector<32x1xf32> to vector<32x128xf32>
    %6 = arith.addf %3, %5 : vector<32x128xf32>
    %7 = tpu.concatenate %0, %0 in 0 : vector<16x128xf32>, vector<16x128xf32> -> vector<32x128xf32>
    %c0_i32 = arith.constant 0 : i32
    %cst_7 = arith.constant 0x7F800000 : f32
    %8:3 = scf.while (%arg17 = %7, %arg18 = %c0_i32, %arg19 = %cst_7) : (vector<32x128xf32>, i32, f32) -> (vector<32x128xf32>, i32, f32) {
      %c300_i32 = arith.constant 300 : i32
      %121 = arith.cmpi slt, %arg18, %c300_i32 : i32
      %cst_70 = arith.constant 1.000000e-10 : f32
      %122 = arith.cmpf oge, %arg19, %cst_70 : f32
      %123 = arith.andi %121, %122 : i1
      scf.condition(%123) %arg17, %arg18, %arg19 : vector<32x128xf32>, i32, f32
    } do {
    ^bb0(%arg17: vector<32x128xf32>, %arg18: i32, %arg19: f32):
      %cst_70 = arith.constant dense<0.000000e+00> : vector<32x128xf32>
      %121 = tpu.matmul %1, %arg17, %cst_70 {dimension_numbers = #tpu.dot_dimension_numbers<[1], [0], [0], [1], [0, 0, 1, 1], [], []>} : vector<32x32xf32>, vector<32x128xf32>, vector<32x128xf32> -> vector<32x128xf32>
      %122 = vector.extract_strided_slice %121 {offsets = [0, 0], sizes = [16, 128], strides = [1, 1]} : vector<32x128xf32> to vector<16x128xf32>
      %c0_71 = arith.constant 0 : index
      %c0_72 = arith.constant 0 : index
      %c0_73 = arith.constant 0 : index
      %123 = vector.load %arg1[%c0_71, %c0_72, %c0_73] : memref<2x128x128xf32, #tpu.memory_space<vmem>>, vector<1x128x128xf32>
      %124 = vector.shape_cast %123 : vector<1x128x128xf32> to vector<128x128xf32>
      %cst_74 = arith.constant dense<0.000000e+00> : vector<16x128xf32>
      %125 = tpu.matmul %122, %124, %cst_74 {dimension_numbers = #tpu.dot_dimension_numbers<[1], [1], [0], [0], [0, 0, 1, 0], [], []>} : vector<16x128xf32>, vector<128x128xf32>, vector<16x128xf32> -> vector<16x128xf32>
      %126 = vector.extract_strided_slice %121 {offsets = [16, 0], sizes = [16, 128], strides = [1, 1]} : vector<32x128xf32> to vector<16x128xf32>
      %c1_75 = arith.constant 1 : index
      %c0_76 = arith.constant 0 : index
      %c0_77 = arith.constant 0 : index
      %127 = vector.load %arg1[%c1_75, %c0_76, %c0_77] : memref<2x128x128xf32, #tpu.memory_space<vmem>>, vector<1x128x128xf32>
      %128 = vector.shape_cast %127 : vector<1x128x128xf32> to vector<128x128xf32>
      %cst_78 = arith.constant dense<0.000000e+00> : vector<16x128xf32>
      %129 = tpu.matmul %126, %128, %cst_78 {dimension_numbers = #tpu.dot_dimension_numbers<[1], [1], [0], [0], [0, 0, 1, 0], [], []>} : vector<16x128xf32>, vector<128x128xf32>, vector<16x128xf32> -> vector<16x128xf32>
      %130 = tpu.concatenate %125, %129 in 0 : vector<16x128xf32>, vector<16x128xf32> -> vector<32x128xf32>
      %131 = arith.addf %130, %7 : vector<32x128xf32>
      %cst_79 = arith.constant dense<0.000000e+00> : vector<32x128xf32>
      %132 = tpu.matmul %1, %131, %cst_79 {dimension_numbers = #tpu.dot_dimension_numbers<[1], [0], [0], [1], [0, 0, 1, 1], [], []>} : vector<32x32xf32>, vector<32x128xf32>, vector<32x128xf32> -> vector<32x128xf32>
      %133 = vector.extract_strided_slice %132 {offsets = [0, 0], sizes = [16, 128], strides = [1, 1]} : vector<32x128xf32> to vector<16x128xf32>
      %c0_80 = arith.constant 0 : index
      %c0_81 = arith.constant 0 : index
      %c0_82 = arith.constant 0 : index
      %134 = vector.load %arg1[%c0_80, %c0_81, %c0_82] : memref<2x128x128xf32, #tpu.memory_space<vmem>>, vector<1x128x128xf32>
      %135 = vector.shape_cast %134 : vector<1x128x128xf32> to vector<128x128xf32>
      %cst_83 = arith.constant dense<0.000000e+00> : vector<16x128xf32>
      %136 = tpu.matmul %133, %135, %cst_83 {dimension_numbers = #tpu.dot_dimension_numbers<[1], [1], [0], [0], [0, 0, 1, 0], [], []>} : vector<16x128xf32>, vector<128x128xf32>, vector<16x128xf32> -> vector<16x128xf32>
      %137 = vector.extract_strided_slice %132 {offsets = [16, 0], sizes = [16, 128], strides = [1, 1]} : vector<32x128xf32> to vector<16x128xf32>
      %c1_84 = arith.constant 1 : index
      %c0_85 = arith.constant 0 : index
      %c0_86 = arith.constant 0 : index
      %138 = vector.load %arg1[%c1_84, %c0_85, %c0_86] : memref<2x128x128xf32, #tpu.memory_space<vmem>>, vector<1x128x128xf32>
      %139 = vector.shape_cast %138 : vector<1x128x128xf32> to vector<128x128xf32>
      %cst_87 = arith.constant dense<0.000000e+00> : vector<16x128xf32>
      %140 = tpu.matmul %137, %139, %cst_87 {dimension_numbers = #tpu.dot_dimension_numbers<[1], [1], [0], [0], [0, 0, 1, 0], [], []>} : vector<16x128xf32>, vector<128x128xf32>, vector<16x128xf32> -> vector<16x128xf32>
      %141 = tpu.concatenate %136, %140 in 0 : vector<16x128xf32>, vector<16x128xf32> -> vector<32x128xf32>
      %142 = arith.addf %141, %7 : vector<32x128xf32>
      %cst_88 = arith.constant dense<0.000000e+00> : vector<32x128xf32>
      %143 = tpu.matmul %1, %142, %cst_88 {dimension_numbers = #tpu.dot_dimension_numbers<[1], [0], [0], [1], [0, 0, 1, 1], [], []>} : vector<32x32xf32>, vector<32x128xf32>, vector<32x128xf32> -> vector<32x128xf32>
      %144 = vector.extract_strided_slice %143 {offsets = [0, 0], sizes = [16, 128], strides = [1, 1]} : vector<32x128xf32> to vector<16x128xf32>
      %c0_89 = arith.constant 0 : index
      %c0_90 = arith.constant 0 : index
      %c0_91 = arith.constant 0 : index
      %145 = vector.load %arg1[%c0_89, %c0_90, %c0_91] : memref<2x128x128xf32, #tpu.memory_space<vmem>>, vector<1x128x128xf32>
      %146 = vector.shape_cast %145 : vector<1x128x128xf32> to vector<128x128xf32>
      %cst_92 = arith.constant dense<0.000000e+00> : vector<16x128xf32>
      %147 = tpu.matmul %144, %146, %cst_92 {dimension_numbers = #tpu.dot_dimension_numbers<[1], [1], [0], [0], [0, 0, 1, 0], [], []>} : vector<16x128xf32>, vector<128x128xf32>, vector<16x128xf32> -> vector<16x128xf32>
      %148 = vector.extract_strided_slice %143 {offsets = [16, 0], sizes = [16, 128], strides = [1, 1]} : vector<32x128xf32> to vector<16x128xf32>
      %c1_93 = arith.constant 1 : index
      %c0_94 = arith.constant 0 : index
      %c0_95 = arith.constant 0 : index
      %149 = vector.load %arg1[%c1_93, %c0_94, %c0_95] : memref<2x128x128xf32, #tpu.memory_space<vmem>>, vector<1x128x128xf32>
      %150 = vector.shape_cast %149 : vector<1x128x128xf32> to vector<128x128xf32>
      %cst_96 = arith.constant dense<0.000000e+00> : vector<16x128xf32>
      %151 = tpu.matmul %148, %150, %cst_96 {dimension_numbers = #tpu.dot_dimension_numbers<[1], [1], [0], [0], [0, 0, 1, 0], [], []>} : vector<16x128xf32>, vector<128x128xf32>, vector<16x128xf32> -> vector<16x128xf32>
      %152 = tpu.concatenate %147, %151 in 0 : vector<16x128xf32>, vector<16x128xf32> -> vector<32x128xf32>
      %153 = arith.addf %152, %7 : vector<32x128xf32>
      %cst_97 = arith.constant dense<0.000000e+00> : vector<32x128xf32>
      %154 = tpu.matmul %1, %153, %cst_97 {dimension_numbers = #tpu.dot_dimension_numbers<[1], [0], [0], [1], [0, 0, 1, 1], [], []>} : vector<32x32xf32>, vector<32x128xf32>, vector<32x128xf32> -> vector<32x128xf32>
      %155 = vector.extract_strided_slice %154 {offsets = [0, 0], sizes = [16, 128], strides = [1, 1]} : vector<32x128xf32> to vector<16x128xf32>
      %c0_98 = arith.constant 0 : index
      %c0_99 = arith.constant 0 : index
      %c0_100 = arith.constant 0 : index
      %156 = vector.load %arg1[%c0_98, %c0_99, %c0_100] : memref<2x128x128xf32, #tpu.memory_space<vmem>>, vector<1x128x128xf32>
      %157 = vector.shape_cast %156 : vector<1x128x128xf32> to vector<128x128xf32>
      %cst_101 = arith.constant dense<0.000000e+00> : vector<16x128xf32>
      %158 = tpu.matmul %155, %157, %cst_101 {dimension_numbers = #tpu.dot_dimension_numbers<[1], [1], [0], [0], [0, 0, 1, 0], [], []>} : vector<16x128xf32>, vector<128x128xf32>, vector<16x128xf32> -> vector<16x128xf32>
      %159 = vector.extract_strided_slice %154 {offsets = [16, 0], sizes = [16, 128], strides = [1, 1]} : vector<32x128xf32> to vector<16x128xf32>
      %c1_102 = arith.constant 1 : index
      %c0_103 = arith.constant 0 : index
      %c0_104 = arith.constant 0 : index
      %160 = vector.load %arg1[%c1_102, %c0_103, %c0_104] : memref<2x128x128xf32, #tpu.memory_space<vmem>>, vector<1x128x128xf32>
      %161 = vector.shape_cast %160 : vector<1x128x128xf32> to vector<128x128xf32>
      %cst_105 = arith.constant dense<0.000000e+00> : vector<16x128xf32>
      %162 = tpu.matmul %159, %161, %cst_105 {dimension_numbers = #tpu.dot_dimension_numbers<[1], [1], [0], [0], [0, 0, 1, 0], [], []>} : vector<16x128xf32>, vector<128x128xf32>, vector<16x128xf32> -> vector<16x128xf32>
      %163 = tpu.concatenate %158, %162 in 0 : vector<16x128xf32>, vector<16x128xf32> -> vector<32x128xf32>
      %164 = arith.addf %163, %7 : vector<32x128xf32>
      %cst_106 = arith.constant dense<0.000000e+00> : vector<32x128xf32>
      %165 = tpu.matmul %1, %164, %cst_106 {dimension_numbers = #tpu.dot_dimension_numbers<[1], [0], [0], [1], [0, 0, 1, 1], [], []>} : vector<32x32xf32>, vector<32x128xf32>, vector<32x128xf32> -> vector<32x128xf32>
      %166 = vector.extract_strided_slice %165 {offsets = [0, 0], sizes = [16, 128], strides = [1, 1]} : vector<32x128xf32> to vector<16x128xf32>
      %c0_107 = arith.constant 0 : index
      %c0_108 = arith.constant 0 : index
      %c0_109 = arith.constant 0 : index
      %167 = vector.load %arg1[%c0_107, %c0_108, %c0_109] : memref<2x128x128xf32, #tpu.memory_space<vmem>>, vector<1x128x128xf32>
      %168 = vector.shape_cast %167 : vector<1x128x128xf32> to vector<128x128xf32>
      %cst_110 = arith.constant dense<0.000000e+00> : vector<16x128xf32>
      %169 = tpu.matmul %166, %168, %cst_110 {dimension_numbers = #tpu.dot_dimension_numbers<[1], [1], [0], [0], [0, 0, 1, 0], [], []>} : vector<16x128xf32>, vector<128x128xf32>, vector<16x128xf32> -> vector<16x128xf32>
      %170 = vector.extract_strided_slice %165 {offsets = [16, 0], sizes = [16, 128], strides = [1, 1]} : vector<32x128xf32> to vector<16x128xf32>
      %c1_111 = arith.constant 1 : index
      %c0_112 = arith.constant 0 : index
      %c0_113 = arith.constant 0 : index
      %171 = vector.load %arg1[%c1_111, %c0_112, %c0_113] : memref<2x128x128xf32, #tpu.memory_space<vmem>>, vector<1x128x128xf32>
      %172 = vector.shape_cast %171 : vector<1x128x128xf32> to vector<128x128xf32>
      %cst_114 = arith.constant dense<0.000000e+00> : vector<16x128xf32>
      %173 = tpu.matmul %170, %172, %cst_114 {dimension_numbers = #tpu.dot_dimension_numbers<[1], [1], [0], [0], [0, 0, 1, 0], [], []>} : vector<16x128xf32>, vector<128x128xf32>, vector<16x128xf32> -> vector<16x128xf32>
      %174 = tpu.concatenate %169, %173 in 0 : vector<16x128xf32>, vector<16x128xf32> -> vector<32x128xf32>
      %175 = arith.addf %174, %7 : vector<32x128xf32>
      %cst_115 = arith.constant dense<0.000000e+00> : vector<32x128xf32>
      %176 = tpu.matmul %1, %175, %cst_115 {dimension_numbers = #tpu.dot_dimension_numbers<[1], [0], [0], [1], [0, 0, 1, 1], [], []>} : vector<32x32xf32>, vector<32x128xf32>, vector<32x128xf32> -> vector<32x128xf32>
      %177 = vector.extract_strided_slice %176 {offsets = [0, 0], sizes = [16, 128], strides = [1, 1]} : vector<32x128xf32> to vector<16x128xf32>
      %c0_116 = arith.constant 0 : index
      %c0_117 = arith.constant 0 : index
      %c0_118 = arith.constant 0 : index
      %178 = vector.load %arg1[%c0_116, %c0_117, %c0_118] : memref<2x128x128xf32, #tpu.memory_space<vmem>>, vector<1x128x128xf32>
      %179 = vector.shape_cast %178 : vector<1x128x128xf32> to vector<128x128xf32>
      %cst_119 = arith.constant dense<0.000000e+00> : vector<16x128xf32>
      %180 = tpu.matmul %177, %179, %cst_119 {dimension_numbers = #tpu.dot_dimension_numbers<[1], [1], [0], [0], [0, 0, 1, 0], [], []>} : vector<16x128xf32>, vector<128x128xf32>, vector<16x128xf32> -> vector<16x128xf32>
      %181 = vector.extract_strided_slice %176 {offsets = [16, 0], sizes = [16, 128], strides = [1, 1]} : vector<32x128xf32> to vector<16x128xf32>
      %c1_120 = arith.constant 1 : index
      %c0_121 = arith.constant 0 : index
      %c0_122 = arith.constant 0 : index
      %182 = vector.load %arg1[%c1_120, %c0_121, %c0_122] : memref<2x128x128xf32, #tpu.memory_space<vmem>>, vector<1x128x128xf32>
      %183 = vector.shape_cast %182 : vector<1x128x128xf32> to vector<128x128xf32>
      %cst_123 = arith.constant dense<0.000000e+00> : vector<16x128xf32>
      %184 = tpu.matmul %181, %183, %cst_123 {dimension_numbers = #tpu.dot_dimension_numbers<[1], [1], [0], [0], [0, 0, 1, 0], [], []>} : vector<16x128xf32>, vector<128x128xf32>, vector<16x128xf32> -> vector<16x128xf32>
      %185 = tpu.concatenate %180, %184 in 0 : vector<16x128xf32>, vector<16x128xf32> -> vector<32x128xf32>
      %186 = arith.addf %185, %7 : vector<32x128xf32>
      %cst_124 = arith.constant dense<0.000000e+00> : vector<32x128xf32>
      %187 = tpu.matmul %1, %186, %cst_124 {dimension_numbers = #tpu.dot_dimension_numbers<[1], [0], [0], [1], [0, 0, 1, 1], [], []>} : vector<32x32xf32>, vector<32x128xf32>, vector<32x128xf32> -> vector<32x128xf32>
      %188 = vector.extract_strided_slice %187 {offsets = [0, 0], sizes = [16, 128], strides = [1, 1]} : vector<32x128xf32> to vector<16x128xf32>
      %c0_125 = arith.constant 0 : index
      %c0_126 = arith.constant 0 : index
      %c0_127 = arith.constant 0 : index
      %189 = vector.load %arg1[%c0_125, %c0_126, %c0_127] : memref<2x128x128xf32, #tpu.memory_space<vmem>>, vector<1x128x128xf32>
      %190 = vector.shape_cast %189 : vector<1x128x128xf32> to vector<128x128xf32>
      %cst_128 = arith.constant dense<0.000000e+00> : vector<16x128xf32>
      %191 = tpu.matmul %188, %190, %cst_128 {dimension_numbers = #tpu.dot_dimension_numbers<[1], [1], [0], [0], [0, 0, 1, 0], [], []>} : vector<16x128xf32>, vector<128x128xf32>, vector<16x128xf32> -> vector<16x128xf32>
      %192 = vector.extract_strided_slice %187 {offsets = [16, 0], sizes = [16, 128], strides = [1, 1]} : vector<32x128xf32> to vector<16x128xf32>
      %c1_129 = arith.constant 1 : index
      %c0_130 = arith.constant 0 : index
      %c0_131 = arith.constant 0 : index
      %193 = vector.load %arg1[%c1_129, %c0_130, %c0_131] : memref<2x128x128xf32, #tpu.memory_space<vmem>>, vector<1x128x128xf32>
      %194 = vector.shape_cast %193 : vector<1x128x128xf32> to vector<128x128xf32>
      %cst_132 = arith.constant dense<0.000000e+00> : vector<16x128xf32>
      %195 = tpu.matmul %192, %194, %cst_132 {dimension_numbers = #tpu.dot_dimension_numbers<[1], [1], [0], [0], [0, 0, 1, 0], [], []>} : vector<16x128xf32>, vector<128x128xf32>, vector<16x128xf32> -> vector<16x128xf32>
      %196 = tpu.concatenate %191, %195 in 0 : vector<16x128xf32>, vector<16x128xf32> -> vector<32x128xf32>
      %197 = arith.addf %196, %7 : vector<32x128xf32>
      %cst_133 = arith.constant dense<0.000000e+00> : vector<32x128xf32>
      %198 = tpu.matmul %1, %197, %cst_133 {dimension_numbers = #tpu.dot_dimension_numbers<[1], [0], [0], [1], [0, 0, 1, 1], [], []>} : vector<32x32xf32>, vector<32x128xf32>, vector<32x128xf32> -> vector<32x128xf32>
      %199 = vector.extract_strided_slice %198 {offsets = [0, 0], sizes = [16, 128], strides = [1, 1]} : vector<32x128xf32> to vector<16x128xf32>
      %c0_134 = arith.constant 0 : index
      %c0_135 = arith.constant 0 : index
      %c0_136 = arith.constant 0 : index
      %200 = vector.load %arg1[%c0_134, %c0_135, %c0_136] : memref<2x128x128xf32, #tpu.memory_space<vmem>>, vector<1x128x128xf32>
      %201 = vector.shape_cast %200 : vector<1x128x128xf32> to vector<128x128xf32>
      %cst_137 = arith.constant dense<0.000000e+00> : vector<16x128xf32>
      %202 = tpu.matmul %199, %201, %cst_137 {dimension_numbers = #tpu.dot_dimension_numbers<[1], [1], [0], [0], [0, 0, 1, 0], [], []>} : vector<16x128xf32>, vector<128x128xf32>, vector<16x128xf32> -> vector<16x128xf32>
      %203 = vector.extract_strided_slice %198 {offsets = [16, 0], sizes = [16, 128], strides = [1, 1]} : vector<32x128xf32> to vector<16x128xf32>
      %c1_138 = arith.constant 1 : index
      %c0_139 = arith.constant 0 : index
      %c0_140 = arith.constant 0 : index
      %204 = vector.load %arg1[%c1_138, %c0_139, %c0_140] : memref<2x128x128xf32, #tpu.memory_space<vmem>>, vector<1x128x128xf32>
      %205 = vector.shape_cast %204 : vector<1x128x128xf32> to vector<128x128xf32>
      %cst_141 = arith.constant dense<0.000000e+00> : vector<16x128xf32>
      %206 = tpu.matmul %203, %205, %cst_141 {dimension_numbers = #tpu.dot_dimension_numbers<[1], [1], [0], [0], [0, 0, 1, 0], [], []>} : vector<16x128xf32>, vector<128x128xf32>, vector<16x128xf32> -> vector<16x128xf32>
      %207 = tpu.concatenate %202, %206 in 0 : vector<16x128xf32>, vector<16x128xf32> -> vector<32x128xf32>
      %208 = arith.addf %207, %7 : vector<32x128xf32>
      %209 = arith.subf %208, %197 : vector<32x128xf32>
      %210 = vector.extract_strided_slice %209 {offsets = [0, 0], sizes = [16, 128], strides = [1, 1]} : vector<32x128xf32> to vector<16x128xf32>
      %211 = arith.mulf %210, %210 : vector<16x128xf32>
      %212 = vector.shape_cast %211 : vector<16x128xf32> to vector<1x16x128xf32>
      %cst_142 = arith.constant dense<0.000000e+00> : vector<1xf32>
      %213 = vector.multi_reduction <add>, %212, %cst_142 [1, 2] : vector<1x16x128xf32> to vector<1xf32>
      %214 = vector.shape_cast %213 : vector<1xf32> to vector<1x1x1xf32>
      %215 = vector.extract %214[0, 0, 0] : f32 from vector<1x1x1xf32>
      %216 = vector.extract_strided_slice %209 {offsets = [16, 0], sizes = [16, 128], strides = [1, 1]} : vector<32x128xf32> to vector<16x128xf32>
      %217 = arith.mulf %216, %216 : vector<16x128xf32>
      %218 = vector.shape_cast %217 : vector<16x128xf32> to vector<1x16x128xf32>
      %cst_143 = arith.constant dense<0.000000e+00> : vector<1xf32>
      %219 = vector.multi_reduction <add>, %218, %cst_143 [1, 2] : vector<1x16x128xf32> to vector<1xf32>
      %220 = vector.shape_cast %219 : vector<1xf32> to vector<1x1x1xf32>
      %221 = vector.extract %220[0, 0, 0] : f32 from vector<1x1x1xf32>
      %222 = arith.maximumf %215, %221 : f32
      %c8_i32 = arith.constant 8 : i32
      %223 = arith.addi %arg18, %c8_i32 : i32
      scf.yield %208, %223, %222 : vector<32x128xf32>, i32, f32
    }
    %c0_8 = arith.constant 0 : index
    %c0_9 = arith.constant 0 : index
    %9 = vector.load %arg3[%c0_8, %c0_9] : memref<16x16xf32, #tpu.memory_space<vmem>>, vector<16x16xf32>
    %c0_10 = arith.constant 0 : index
    %c0_11 = arith.constant 0 : index
    %10 = vector.load %arg4[%c0_10, %c0_11] : memref<16x1xf32, #tpu.memory_space<vmem>>, vector<16x1xf32>
    %c0_12 = arith.constant 0 : index
    %c0_13 = arith.constant 0 : index
    %11 = vector.load %arg5[%c0_12, %c0_13] : memref<16x1xf32, #tpu.memory_space<vmem>>, vector<16x1xf32>
    %12 = vector.extract_strided_slice %8#0 {offsets = [0, 0], sizes = [16, 128], strides = [1, 1]} : vector<32x128xf32> to vector<16x128xf32>
    %cst_14 = arith.constant dense<0.000000e+00> : vector<16x128xf32>
    %13 = tpu.matmul %9, %12, %cst_14 {dimension_numbers = #tpu.dot_dimension_numbers<[1], [0], [0], [1], [0, 0, 1, 1], [], []>} : vector<16x16xf32>, vector<16x128xf32>, vector<16x128xf32> -> vector<16x128xf32>
    %14 = vector.broadcast %10 : vector<16x1xf32> to vector<16x128xf32>
    %15 = arith.addf %13, %14 : vector<16x128xf32>
    %16 = math.tanh %15 : vector<16x128xf32>
    %17 = vector.broadcast %11 : vector<16x1xf32> to vector<16x128xf32>
    %18 = arith.mulf %16, %17 : vector<16x128xf32>
    %cst_15 = arith.constant dense<0.000000e+00> : vector<128xf32>
    %19 = vector.multi_reduction <add>, %18, %cst_15 [0] : vector<16x128xf32> to vector<128xf32>
    %20 = vector.shape_cast %19 : vector<128xf32> to vector<1x128xf32>
    %21 = vector.extract_strided_slice %8#0 {offsets = [16, 0], sizes = [16, 128], strides = [1, 1]} : vector<32x128xf32> to vector<16x128xf32>
    %cst_16 = arith.constant dense<0.000000e+00> : vector<16x128xf32>
    %22 = tpu.matmul %9, %21, %cst_16 {dimension_numbers = #tpu.dot_dimension_numbers<[1], [0], [0], [1], [0, 0, 1, 1], [], []>} : vector<16x16xf32>, vector<16x128xf32>, vector<16x128xf32> -> vector<16x128xf32>
    %23 = vector.broadcast %10 : vector<16x1xf32> to vector<16x128xf32>
    %24 = arith.addf %22, %23 : vector<16x128xf32>
    %25 = math.tanh %24 : vector<16x128xf32>
    %26 = vector.broadcast %11 : vector<16x1xf32> to vector<16x128xf32>
    %27 = arith.mulf %25, %26 : vector<16x128xf32>
    %cst_17 = arith.constant dense<0.000000e+00> : vector<128xf32>
    %28 = vector.multi_reduction <add>, %27, %cst_17 [0] : vector<16x128xf32> to vector<128xf32>
    %29 = vector.shape_cast %28 : vector<128xf32> to vector<1x128xf32>
    %30 = arith.maximumf %20, %29 : vector<1x128xf32>
    %31 = arith.subf %20, %30 : vector<1x128xf32>
    %32 = math.exp %31 : vector<1x128xf32>
    %33 = arith.subf %29, %30 : vector<1x128xf32>
    %34 = math.exp %33 : vector<1x128xf32>
    %35 = arith.addf %32, %34 : vector<1x128xf32>
    %cst_18 = arith.constant 1.000000e+00 : f32
    %36 = vector.broadcast %cst_18 : f32 to vector<1x128xf32>
    %37 = arith.divf %36, %35 : vector<1x128xf32>
    %38 = arith.mulf %32, %37 : vector<1x128xf32>
    %39 = vector.broadcast %38 : vector<1x128xf32> to vector<16x128xf32>
    %40 = arith.mulf %12, %39 : vector<16x128xf32>
    %41 = arith.mulf %34, %37 : vector<1x128xf32>
    %42 = vector.broadcast %41 : vector<1x128xf32> to vector<16x128xf32>
    %43 = arith.mulf %21, %42 : vector<16x128xf32>
    %44 = arith.addf %40, %43 : vector<16x128xf32>
    %c0_19 = arith.constant 0 : index
    %c0_20 = arith.constant 0 : index
    %45 = vector.load %arg6[%c0_19, %c0_20] : memref<32x16xf32, #tpu.memory_space<vmem>>, vector<32x16xf32>
    %cst_21 = arith.constant dense<0.000000e+00> : vector<32x128xf32>
    %46 = tpu.matmul %45, %44, %cst_21 {dimension_numbers = #tpu.dot_dimension_numbers<[1], [0], [0], [1], [0, 0, 1, 1], [], []>} : vector<32x16xf32>, vector<16x128xf32>, vector<32x128xf32> -> vector<32x128xf32>
    %c0_22 = arith.constant 0 : index
    %c0_23 = arith.constant 0 : index
    %47 = vector.load %arg7[%c0_22, %c0_23] : memref<32x1xf32, #tpu.memory_space<vmem>>, vector<32x1xf32>
    %48 = vector.broadcast %47 : vector<32x1xf32> to vector<32x128xf32>
    %49 = arith.addf %46, %48 : vector<32x128xf32>
    %50 = arith.addf %49, %6 : vector<32x128xf32>
    %c0_24 = arith.constant 0 : index
    %c0_25 = arith.constant 0 : index
    %c0_26 = arith.constant 0 : index
    %51 = vector.load %arg12[%c0_24, %c0_25, %c0_26] : memref<3x32x1xf32, #tpu.memory_space<vmem>>, vector<1x32x1xf32>
    %52 = vector.shape_cast %51 : vector<1x32x1xf32> to vector<32x1xf32>
    %53 = vector.broadcast %52 : vector<32x1xf32> to vector<32x128xf32>
    %54 = arith.mulf %50, %53 : vector<32x128xf32>
    %c0_27 = arith.constant 0 : index
    %c0_28 = arith.constant 0 : index
    %c0_29 = arith.constant 0 : index
    %55 = vector.load %arg13[%c0_27, %c0_28, %c0_29] : memref<3x32x1xf32, #tpu.memory_space<vmem>>, vector<1x32x1xf32>
    %56 = vector.shape_cast %55 : vector<1x32x1xf32> to vector<32x1xf32>
    %57 = vector.broadcast %56 : vector<32x1xf32> to vector<32x128xf32>
    %58 = arith.addf %54, %57 : vector<32x128xf32>
    %cst_30 = arith.constant 0.000000e+00 : f32
    %59 = vector.broadcast %cst_30 : f32 to vector<32x128xf32>
    %60 = arith.cmpf ogt, %58, %59 : vector<32x128xf32>
    %cst_31 = arith.constant 0.000000e+00 : f32
    %61 = vector.broadcast %cst_31 : f32 to vector<32x128xf32>
    %62 = arith.minimumf %58, %61 : vector<32x128xf32>
    %63 = math.exp %62 : vector<32x128xf32>
    %cst_32 = arith.constant 1.000000e+00 : f32
    %64 = vector.broadcast %cst_32 : f32 to vector<32x128xf32>
    %65 = arith.subf %63, %64 : vector<32x128xf32>
    %66 = arith.select %60, %58, %65 : vector<32x128xi1>, vector<32x128xf32>
    %c0_33 = arith.constant 0 : index
    %c0_34 = arith.constant 0 : index
    %c0_35 = arith.constant 0 : index
    %67 = vector.load %arg10[%c0_33, %c0_34, %c0_35] : memref<2x32x32xf32, #tpu.memory_space<vmem>>, vector<1x32x32xf32>
    %68 = vector.shape_cast %67 : vector<1x32x32xf32> to vector<32x32xf32>
    %cst_36 = arith.constant dense<0.000000e+00> : vector<32x128xf32>
    %69 = tpu.matmul %68, %66, %cst_36 {dimension_numbers = #tpu.dot_dimension_numbers<[1], [0], [0], [1], [0, 0, 1, 1], [], []>} : vector<32x32xf32>, vector<32x128xf32>, vector<32x128xf32> -> vector<32x128xf32>
    %c0_37 = arith.constant 0 : index
    %c0_38 = arith.constant 0 : index
    %c0_39 = arith.constant 0 : index
    %70 = vector.load %arg11[%c0_37, %c0_38, %c0_39] : memref<2x32x1xf32, #tpu.memory_space<vmem>>, vector<1x32x1xf32>
    %71 = vector.shape_cast %70 : vector<1x32x1xf32> to vector<32x1xf32>
    %72 = vector.broadcast %71 : vector<32x1xf32> to vector<32x128xf32>
    %73 = arith.addf %69, %72 : vector<32x128xf32>
    %74 = arith.addf %73, %66 : vector<32x128xf32>
    %c1 = arith.constant 1 : index
    %c0_40 = arith.constant 0 : index
    %c0_41 = arith.constant 0 : index
    %75 = vector.load %arg12[%c1, %c0_40, %c0_41] : memref<3x32x1xf32, #tpu.memory_space<vmem>>, vector<1x32x1xf32>
    %76 = vector.shape_cast %75 : vector<1x32x1xf32> to vector<32x1xf32>
    %77 = vector.broadcast %76 : vector<32x1xf32> to vector<32x128xf32>
    %78 = arith.mulf %74, %77 : vector<32x128xf32>
    %c1_42 = arith.constant 1 : index
    %c0_43 = arith.constant 0 : index
    %c0_44 = arith.constant 0 : index
    %79 = vector.load %arg13[%c1_42, %c0_43, %c0_44] : memref<3x32x1xf32, #tpu.memory_space<vmem>>, vector<1x32x1xf32>
    %80 = vector.shape_cast %79 : vector<1x32x1xf32> to vector<32x1xf32>
    %81 = vector.broadcast %80 : vector<32x1xf32> to vector<32x128xf32>
    %82 = arith.addf %78, %81 : vector<32x128xf32>
    %cst_45 = arith.constant 0.000000e+00 : f32
    %83 = vector.broadcast %cst_45 : f32 to vector<32x128xf32>
    %84 = arith.cmpf ogt, %82, %83 : vector<32x128xf32>
    %cst_46 = arith.constant 0.000000e+00 : f32
    %85 = vector.broadcast %cst_46 : f32 to vector<32x128xf32>
    %86 = arith.minimumf %82, %85 : vector<32x128xf32>
    %87 = math.exp %86 : vector<32x128xf32>
    %cst_47 = arith.constant 1.000000e+00 : f32
    %88 = vector.broadcast %cst_47 : f32 to vector<32x128xf32>
    %89 = arith.subf %87, %88 : vector<32x128xf32>
    %90 = arith.select %84, %82, %89 : vector<32x128xi1>, vector<32x128xf32>
    %c1_48 = arith.constant 1 : index
    %c0_49 = arith.constant 0 : index
    %c0_50 = arith.constant 0 : index
    %91 = vector.load %arg10[%c1_48, %c0_49, %c0_50] : memref<2x32x32xf32, #tpu.memory_space<vmem>>, vector<1x32x32xf32>
    %92 = vector.shape_cast %91 : vector<1x32x32xf32> to vector<32x32xf32>
    %cst_51 = arith.constant dense<0.000000e+00> : vector<32x128xf32>
    %93 = tpu.matmul %92, %90, %cst_51 {dimension_numbers = #tpu.dot_dimension_numbers<[1], [0], [0], [1], [0, 0, 1, 1], [], []>} : vector<32x32xf32>, vector<32x128xf32>, vector<32x128xf32> -> vector<32x128xf32>
    %c1_52 = arith.constant 1 : index
    %c0_53 = arith.constant 0 : index
    %c0_54 = arith.constant 0 : index
    %94 = vector.load %arg11[%c1_52, %c0_53, %c0_54] : memref<2x32x1xf32, #tpu.memory_space<vmem>>, vector<1x32x1xf32>
    %95 = vector.shape_cast %94 : vector<1x32x1xf32> to vector<32x1xf32>
    %96 = vector.broadcast %95 : vector<32x1xf32> to vector<32x128xf32>
    %97 = arith.addf %93, %96 : vector<32x128xf32>
    %98 = arith.addf %97, %90 : vector<32x128xf32>
    %c2 = arith.constant 2 : index
    %c0_55 = arith.constant 0 : index
    %c0_56 = arith.constant 0 : index
    %99 = vector.load %arg12[%c2, %c0_55, %c0_56] : memref<3x32x1xf32, #tpu.memory_space<vmem>>, vector<1x32x1xf32>
    %100 = vector.shape_cast %99 : vector<1x32x1xf32> to vector<32x1xf32>
    %101 = vector.broadcast %100 : vector<32x1xf32> to vector<32x128xf32>
    %102 = arith.mulf %98, %101 : vector<32x128xf32>
    %c2_57 = arith.constant 2 : index
    %c0_58 = arith.constant 0 : index
    %c0_59 = arith.constant 0 : index
    %103 = vector.load %arg13[%c2_57, %c0_58, %c0_59] : memref<3x32x1xf32, #tpu.memory_space<vmem>>, vector<1x32x1xf32>
    %104 = vector.shape_cast %103 : vector<1x32x1xf32> to vector<32x1xf32>
    %105 = vector.broadcast %104 : vector<32x1xf32> to vector<32x128xf32>
    %106 = arith.addf %102, %105 : vector<32x128xf32>
    %cst_60 = arith.constant 0.000000e+00 : f32
    %107 = vector.broadcast %cst_60 : f32 to vector<32x128xf32>
    %108 = arith.cmpf ogt, %106, %107 : vector<32x128xf32>
    %cst_61 = arith.constant 0.000000e+00 : f32
    %109 = vector.broadcast %cst_61 : f32 to vector<32x128xf32>
    %110 = arith.minimumf %106, %109 : vector<32x128xf32>
    %111 = math.exp %110 : vector<32x128xf32>
    %cst_62 = arith.constant 1.000000e+00 : f32
    %112 = vector.broadcast %cst_62 : f32 to vector<32x128xf32>
    %113 = arith.subf %111, %112 : vector<32x128xf32>
    %114 = arith.select %108, %106, %113 : vector<32x128xi1>, vector<32x128xf32>
    %c0_63 = arith.constant 0 : index
    %c0_64 = arith.constant 0 : index
    %115 = vector.load %arg14[%c0_63, %c0_64] : memref<8x32xf32, #tpu.memory_space<vmem>>, vector<8x32xf32>
    %cst_65 = arith.constant dense<0.000000e+00> : vector<8x128xf32>
    %116 = tpu.matmul %115, %114, %cst_65 {dimension_numbers = #tpu.dot_dimension_numbers<[1], [0], [0], [1], [0, 0, 1, 1], [], []>} : vector<8x32xf32>, vector<32x128xf32>, vector<8x128xf32> -> vector<8x128xf32>
    %c0_66 = arith.constant 0 : index
    %c0_67 = arith.constant 0 : index
    %117 = vector.load %arg15[%c0_66, %c0_67] : memref<8x1xf32, #tpu.memory_space<vmem>>, vector<8x1xf32>
    %118 = vector.broadcast %117 : vector<8x1xf32> to vector<8x128xf32>
    %119 = arith.addf %116, %118 : vector<8x128xf32>
    %c0_68 = arith.constant 0 : index
    %c0_69 = arith.constant 0 : index
    %120 = vector.load %arg16[%c0_68, %c0_69] : memref<8x128xf32, #tpu.memory_space<vmem>>, vector<8x128xf32>
    tpu.vector_store %arg16[%c0_68, %c0_69], %119 {strides = array<i32>} : memref<8x128xf32, #tpu.memory_space<vmem>>, vector<8x128xf32>,
    return
  }
}

</mosaic_0001>

<bundles_post_ra>
// kernel: mgnni_m_att_stack_forward.1
= control target key start
LH: loop header
LB: loop body
LE: loop exit
PB: predicated region body
PF: predicated region fallthrough
CT: control target
= control target key end

     0   :  { %s6073_s0 = inlined_call_operand.vmem [shape: f32[16,128], index: 0, kind: input, shape index: {}]   ;;  %s6074_s1 = inlined_call_operand.vmem [shape: f32[2,128,128], index: 1, kind: input, shape index: {}]   ;;  %s6075_s2 = inlined_call_operand.vmem [shape: f32[32,32], index: 2, kind: input, shape index: {}]   ;;  %s6076_s3 = inlined_call_operand.vmem [shape: f32[16,16], index: 3, kind: input, shape index: {}]   ;;  %s6077_s4 = inlined_call_operand.vmem [shape: f32[16,1], index: 4, kind: input, shape index: {}]   ;;  %s6078_s5 = inlined_call_operand.vmem [shape: f32[16,1], index: 5, kind: input, shape index: {}]   ;;  %s6079_s6 = inlined_call_operand.vmem [shape: f32[32,16], index: 6, kind: input, shape index: {}]   ;;  %s6080_s7 = inlined_call_operand.vmem [shape: f32[32,1], index: 7, kind: input, shape index: {}]   ;;  %s6081_s8 = inlined_call_operand.vmem [shape: f32[32,16], index: 8, kind: input, shape index: {}]   ;;  %s6082_s9 = inlined_call_operand.vmem [shape: f32[32,1], index: 9, kind: input, shape index: {}]   ;;  %s6083_s10 = inlined_call_operand.vmem [shape: f32[2,32,32], index: 10, kind: input, shape index: {}]   ;;  %s6084_s11 = inlined_call_operand.vmem [shape: f32[2,32,1], index: 11, kind: input, shape index: {}]   ;;  %s6085_s12 = inlined_call_operand.vmem [shape: f32[3,32,1], index: 12, kind: input, shape index: {}]   ;;  %s6086_s13 = inlined_call_operand.vmem [shape: f32[3,32,1], index: 13, kind: input, shape index: {}]   ;;  %s6087_s14 = inlined_call_operand.vmem [shape: f32[8,32], index: 14, kind: input, shape index: {}]   ;;  %s6088_s15 = inlined_call_operand.vmem [shape: f32[8,1], index: 15, kind: input, shape index: {}]   ;;  %s6089_s16 = inlined_call_operand.hbm [shape: f32[8,128], index: 16, kind: output, shape index: {}]  }
   0x1   :  { %6091 = sst [smem:[#allocation5_spill]] %s6073_s0 }
   0x2   :  { %21 = vsyncpa [#allocation3], 0  ;;  %s6092_s23 = sld [smem:[#allocation5_spill]]  ;;  %v5275_v2 = vld [vmem:[%s6075_s2] sm:$0xff]  ;;  %v5280_v3 = vld [vmem:[%s6075_s2 + $0x8] sm:$0xff]  ;;  %v5172_v6 = vmov 0  }
   0x3   :  { %v5285_v4 = vld [vmem:[%s6075_s2 + $0x10] sm:$0xff]  ;;  %5067 = vset.pattern.permute.xlu1 %v5172_v6  ;;  %5066 = vset.pattern.permute.xlu0 %v5172_v6  ;;  %v5294_v7 = vld [vmem:[%s6075_s2 + $0x18] sm:$0xff]  ;;  %v60_v8 = vld [vmem:[%s6081_s8] sm:$0xff]  ;;  %vm88_vm0 = vcmask 130048   ;;  %s5332_s18 = smov 0  }
   0x4   :  { %v62_v9 = vld [vmem:[%s6081_s8 + $0x10] sm:$0xff]  ;;  %v61_v11 = vld [vmem:[%s6081_s8 + $0x8] sm:$0xff]  ;;  %v63_v12 = vld [vmem:[%s6081_s8 + $0x18] sm:$0xff]  ;;  %3660 = vmatprep.mubr.msk.f32.mxu0 %vm88_vm0, %v60_v8 }
   0x5   :  { %v66_v10 = vld [vmem:[%s6082_s9 + $0x10] sm:$0xff]  ;;  %v64_v13 = vld [vmem:[%s6082_s9] sm:$0xff]  ;;  %3663 = vmatprep.mubr.msk.f32.mxu1 %vm88_vm0, %v62_v9  ;;  %v67_v14 = vld [vmem:[%s6082_s9 + $0x18] sm:$0xff] }
   0x6   :  { %80 = vperm.xlu1 %5067, %v66_v10   ;;  %70 = vperm.xlu0 %5066, %v64_v13   ;;  %v65_v15 = vld [vmem:[%s6082_s9 + $0x8] sm:$0xff] }
   0x8   :  { %v5265_v0 = vld [vmem:[%s6092_s23] sm:$0xff]   ;;  %v5270_v1 = vld [vmem:[%s6092_s23 + $0x8] sm:$0xff]  }
   0x9   :  { %v4401_v5 = vpack.c.bf16 %v5270_v1, %v5265_v0  ;;  %v6093_v28 = vmov %v5270_v1  ;;  %v6094_v29 = vmov %v5265_v0  ;;  %v6095_v30 = vmov %v5270_v1 }
   0xa   :  { %85 = vperm.xlu1 %5067, %v67_v14   ;;  %75 = vperm.xlu0 %5066, %v65_v15   ;;  %v6096_v31 = vmov %v5265_v0 }
   0xb   :  { %4402 = vmatprep.subr.bf16.mxu0 %v4401_v5  ;;  %5015 = vmatprep.subr.bf16.mxu1 %v4401_v5 }
   0xc   :  { %4404 = vmatpush3.bf16.msra.mxu0 %v4401_v5  ;;  %5016 = vmatpush3.bf16.msra.mxu1 %v4401_v5 }
   0xf   :  { %3661 = vmatmul.mubr.msk.f32.vlgmr.msra.gmra.mrb[0].mxu0 %vm88_vm0, %v61_v11  ;;  %3664 = vmatmul.mubr.msk.f32.vlgmr.msra.gmra.mrb[0].mxu1 %vm88_vm0, %v63_v12 }
  0x85   :  { %v81_v16 = vpop.permute.xlu1 %80  ;;  %v71_v17 = vpop.permute.xlu0 %70 }
  0x89   :  { %v86_v18 = vpop.permute.xlu1 %85  ;;  %v76_v19 = vpop.permute.xlu0 %75 }
  0xe2   :  { %v3662_v20 = vpop.f32.mrb[0].mxu0  ;;  %v3665_v21 = vpop.f32.mrb[0].mxu1 }
  0xe3   :  { %v5324_v22 = vadd.f32 %v3662_v20, %v76_v19  ;;  %v5326_v23 = vadd.f32 %v3665_v21, %v86_v18  ;;  %v167_v24 = vpop.f32.mrb[1].mxu0  ;;  %v177_v25 = vpop.f32.mrb[1].mxu1 }
  0xe4   :  { %v5328_v26 = vadd.f32 %v167_v24, %v71_v17  ;;  %v5330_v27 = vadd.f32 %v177_v25, %v81_v16 }
  0xe5 LB: > { %v297_v32 = vld [vmem:[%s6074_s1] sm:$0xff]  ;;  %v298_v33 = vld [vmem:[%s6074_s1 + $0x8] sm:$0xff]  ;;  %v299_v34 = vld [vmem:[%s6074_s1 + $0x10] sm:$0xff]  ;;  %v4405_v36 = vpack.c.bf16 %v5166_v30, %v5170_v31  ;;  %v4409_v37 = vpack.c.bf16 %v5158_v28, %v5162_v29  ;;  %vm199_vm1 = vcmask 261120   ;;  %s2186_s18 = sadd.s32 8, %s5154_s18   ;;  %v5170_v31 = vphi %v6096_v31, %v6103_v31   ;;  %v5166_v30 = vphi %v6095_v30, %v6102_v30   ;;  %v5162_v29 = vphi %v6094_v29, %v6101_v29   ;;  %v5158_v28 = vphi %v6093_v28, %v6100_v28   ;;  %s5154_s18 = sphi %s5332_s18, %s2186_s18  }
  0xe6   : > { %v300_v35 = vld [vmem:[%s6074_s1 + $0x18] sm:$0xff]  ;;  %v5365_v38 = vpack.c.bf16 %v298_v33, %v297_v32  ;;  %3674 = vmatprep.mubr.msk.f32.mxu0 %vm199_vm1, %v5275_v2  ;;  %v3166_v39 = vld [vmem:[%s6074_s1 + $0x80] sm:$0xff]  ;;  %v3167_v40 = vld [vmem:[%s6074_s1 + $0x88] sm:$0xff]  ;;  %p193_p0 = scmp.lt.s32.totalorder %s2186_s18, 300 }
  0xe7   : > { %v5375_v41 = vpack.c.bf16 %v300_v35, %v299_v34  ;;  %4406 = vmatprep.subr.bf16.mxu0 %v4405_v36  ;;  %v5379_v42 = vpack.c.bf16 %v3167_v40, %v3166_v39  ;;  %v301_v43 = vld [vmem:[%s6074_s1 + $0x20] sm:$0xff]  ;;  %v302_v44 = vld [vmem:[%s6074_s1 + $0x28] sm:$0xff]  ;;  %v3168_v46 = vld [vmem:[%s6074_s1 + $0x90] sm:$0xff] }
  0xe8   : > { %4414 = vmatprep.subr.bf16.mxu1 %v5365_v38  ;;  %4408 = vmatpush3.bf16.msra.mxu0 %v4405_v36  ;;  %v5389_v45 = vpack.c.bf16 %v302_v44, %v301_v43  ;;  %v3169_v47 = vld [vmem:[%s6074_s1 + $0x98] sm:$0xff]  ;;  %v303_v49 = vld [vmem:[%s6074_s1 + $0x30] sm:$0xff]  ;;  %v3170_v52 = vld [vmem:[%s6074_s1 + $0xa0] sm:$0xff] }
  0xe9   : > { %4416 = vmatpush3.bf16.xpose.msra.mxu1 %v5365_v38  ;;  %4410 = vmatprep.subr.bf16.mxu0 %v4409_v37  ;;  %v5403_v48 = vpack.c.bf16 %v3169_v47, %v3168_v46  ;;  %v304_v50 = vld [vmem:[%s6074_s1 + $0x38] sm:$0xff]  ;;  %v3171_v53 = vld [vmem:[%s6074_s1 + $0xa8] sm:$0xff]  ;;  %v305_v55 = vld [vmem:[%s6074_s1 + $0x40] sm:$0xff] }
  0xea   : > { %4418 = vmatprep.subr.bf16.mxu1 %v5375_v41  ;;  %v5414_v51 = vpack.c.bf16 %v304_v50, %v303_v49  ;;  %v5425_v54 = vpack.c.bf16 %v3171_v53, %v3170_v52  ;;  %v306_v56 = vld [vmem:[%s6074_s1 + $0x48] sm:$0xff]  ;;  %v3172_v58 = vld [vmem:[%s6074_s1 + $0xb0] sm:$0xff]  ;;  %v3173_v59 = vld [vmem:[%s6074_s1 + $0xb8] sm:$0xff] }
  0xeb   : > { %v5434_v57 = vpack.c.bf16 %v306_v56, %v305_v55  ;;  %v5445_v60 = vpack.c.bf16 %v3173_v59, %v3172_v58  ;;  %v307_v61 = vld [vmem:[%s6074_s1 + $0x50] sm:$0xff]  ;;  %v308_v62 = vld [vmem:[%s6074_s1 + $0x58] sm:$0xff]  ;;  %v3174_v5 = vld [vmem:[%s6074_s1 + $0xc0] sm:$0xff] }
  0xec   : > { %4412 = vmatpush3.bf16.msra.mxu0 %v4409_v37  ;;  %v5454_v63 = vpack.c.bf16 %v308_v62, %v307_v61  ;;  %v3175_v8 = vld [vmem:[%s6074_s1 + $0xc8] sm:$0xff]  ;;  %v309_v10 = vld [vmem:[%s6074_s1 + $0x60] sm:$0xff]  ;;  %v3176_v13 = vld [vmem:[%s6074_s1 + $0xd0] sm:$0xff] }
  0xed   : > { %4446 = vmatprep.subr.bf16.mxu0 %v5379_v42  ;;  %v5465_v9 = vpack.c.bf16 %v3175_v8, %v3174_v5  ;;  %v310_v11 = vld [vmem:[%s6074_s1 + $0x68] sm:$0xff]  ;;  %v3177_v14 = vld [vmem:[%s6074_s1 + $0xd8] sm:$0xff]  ;;  %v311_v16 = vld [vmem:[%s6074_s1 + $0x70] sm:$0xff] }
  0xee   : > { %v5474_v12 = vpack.c.bf16 %v310_v11, %v309_v10  ;;  %v5485_v15 = vpack.c.bf16 %v3177_v14, %v3176_v13  ;;  %v312_v17 = vld [vmem:[%s6074_s1 + $0x78] sm:$0xff]  ;;  %v3178_v19 = vld [vmem:[%s6074_s1 + $0xe0] sm:$0xff]  ;;  %v3179_v20 = vld [vmem:[%s6074_s1 + $0xe8] sm:$0xff] }
  0xef   : > { %3675 = vmatmul.mubr.msk.f32.vlgmr.msra.gmra.mrb[0].mxu0 %vm199_vm1, %v5280_v3  ;;  %v5494_v18 = vpack.c.bf16 %v312_v17, %v311_v16  ;;  %v5505_v21 = vpack.c.bf16 %v3179_v20, %v3178_v19  ;;  %v3180_v24 = vld [vmem:[%s6074_s1 + $0xf0] sm:$0xff]  ;;  %v3181_v25 = vld [vmem:[%s6074_s1 + $0xf8] sm:$0xff] }
  0xf0   : > { %3677 = vmatprep.mubr.msk.f32.mxu0 %vm199_vm1, %v5285_v4  ;;  %v5516_v28 = vpack.c.bf16 %v3181_v25, %v3180_v24 }
  0xf1   : > { %4420 = vmatpush3.bf16.xpose.msra.mxu1 %v5375_v41 }
  0xf2   : > { %4422 = vmatprep.subr.bf16.mxu1 %v5389_v45 }
  0xf3   : > { %3678 = vmatmul.mubr.msk.f32.gmra.mrb[2].mxu0 %vm199_vm1, %v5294_v7 }
  0xf5   : > { %4448 = vmatpush3.bf16.xpose.msra.mxu0 %v5379_v42 }
  0xf6   : > { %4450 = vmatprep.subr.bf16.mxu0 %v5403_v48 }
  0xf9   : > { %4424 = vmatpush3.bf16.xpose.msra.mxu1 %v5389_v45 }
  0xfa   : > { %4426 = vmatprep.subr.bf16.mxu1 %v5414_v51 }
  0xfd   : > { %4452 = vmatpush3.bf16.xpose.msra.mxu0 %v5403_v48 }
  0xfe   : > { %4454 = vmatprep.subr.bf16.mxu0 %v5425_v54 }
 0x101   : > { %4428 = vmatpush3.bf16.xpose.msra.mxu1 %v5414_v51 }
 0x102   : > { %4430 = vmatprep.subr.bf16.mxu1 %v5434_v57 }
 0x105   : > { %4456 = vmatpush3.bf16.xpose.msra.mxu0 %v5425_v54 }
 0x106   : > { %4458 = vmatprep.subr.bf16.mxu0 %v5445_v60 }
 0x109   : > { %4432 = vmatpush3.bf16.xpose.msra.mxu1 %v5434_v57 }
 0x10a   : > { %4434 = vmatprep.subr.bf16.mxu1 %v5454_v63 }
 0x10d   : > { %4460 = vmatpush3.bf16.xpose.msra.mxu0 %v5445_v60 }
 0x10e   : > { %4462 = vmatprep.subr.bf16.mxu0 %v5465_v9 }
 0x111   : > { %4436 = vmatpush3.bf16.xpose.msra.mxu1 %v5454_v63 }
 0x112   : > { %4438 = vmatprep.subr.bf16.mxu1 %v5474_v12 }
 0x115   : > { %4464 = vmatpush3.bf16.xpose.msra.mxu0 %v5465_v9 }
 0x116   : > { %4466 = vmatprep.subr.bf16.mxu0 %v5485_v15 }
 0x119   : > { %4440 = vmatpush3.bf16.xpose.msra.mxu1 %v5474_v12 }
 0x11a   : > { %4442 = vmatprep.subr.bf16.mxu1 %v5494_v18 }
 0x11d   : > { %4468 = vmatpush3.bf16.xpose.msra.mxu0 %v5485_v15 }
 0x11e   : > { %4470 = vmatprep.subr.bf16.mxu0 %v5505_v21 }
 0x121   : > { %4444 = vmatpush3.bf16.xpose.msra.mxu1 %v5494_v18 }
 0x125   : > { %4472 = vmatpush3.bf16.xpose.msra.mxu0 %v5505_v21 }
 0x126   : > { %4474 = vmatprep.subr.bf16.mxu0 %v5516_v28 }
 0x12d   : > { %4476 = vmatpush3.bf16.xpose.msra.mxu0 %v5516_v28 }
 0x12e   : > { %4486 = vmatprep.subr.bf16.mxu0 %v5365_v38 }
 0x1c2   : > { %v3676_v29 = vpop.f32.mrb[0].mxu0 }
 0x1c3   : > { %v278_v30 = vpop.f32.mrb[1].mxu0 }
 0x1c4   : > { %3712 = vmatprep.mubr.f32.mxu1 %v278_v30 }
 0x1c5   : > { %3713 = vmatmul.mubr.f32.vlgmr.msra.gmra.mrb[0].mxu1 %v3676_v29 }
 0x1c6   : > { %v3679_v31 = vpop.f32.mrb[2].mxu0  ;;  %3758 = vmatprep.mubr.msk.f32.mxu1 %vm199_vm1, %v5275_v2 }
 0x1c7   : > { %v288_v32 = vpop.f32.mrb[3].mxu0 }
 0x1c8   : > { %3747 = vmatprep.mubr.f32.mxu0 %v288_v32 }
 0x1c9   : > { %3748 = vmatmul.mubr.f32.vlgmr.msra.gmra.mrb[4].mxu0 %v3679_v31 }
 0x1ca   : > { %4488 = vmatpush3.bf16.xpose.msra.mxu0 %v5365_v38 }
 0x1cb   : > { %4490 = vmatprep.subr.bf16.mxu0 %v5375_v41 }
 0x1d2   : > { %4492 = vmatpush3.bf16.xpose.msra.mxu0 %v5375_v41 }
 0x1d3   : > { %4494 = vmatprep.subr.bf16.mxu0 %v5389_v45 }
 0x1da   : > { %4496 = vmatpush3.bf16.xpose.msra.mxu0 %v5389_v45 }
 0x1db   : > { %4498 = vmatprep.subr.bf16.mxu0 %v5414_v51 }
 0x1e2   : > { %4500 = vmatpush3.bf16.xpose.msra.mxu0 %v5414_v51 }
 0x1e3   : > { %4502 = vmatprep.subr.bf16.mxu0 %v5434_v57 }
 0x1ea   : > { %4504 = vmatpush3.bf16.xpose.msra.mxu0 %v5434_v57 }
 0x1eb   : > { %4506 = vmatprep.subr.bf16.mxu0 %v5454_v63 }
 0x1f2   : > { %4508 = vmatpush3.bf16.xpose.msra.mxu0 %v5454_v63 }
 0x1f3   : > { %4510 = vmatprep.subr.bf16.mxu0 %v5474_v12 }
 0x1fa   : > { %4512 = vmatpush3.bf16.xpose.msra.mxu0 %v5474_v12 }
 0x1fb   : > { %4514 = vmatprep.subr.bf16.mxu0 %v5494_v18 }
 0x202   : > { %4516 = vmatpush3.bf16.xpose.msra.mxu0 %v5494_v18 }
 0x298   : > { %v3714_v33 = vpop.f32.mrb[0].mxu1 }
 0x299   : > { %v481_v34 = vadd.f32 %v3714_v33, %v5270_v1  ;;  %v379_v35 = vpop.f32.mrb[1].mxu1 }
 0x29a   : > { %v480_v36 = vadd.f32 %v379_v35, %v5265_v0 }
 0x29c   : > { %v4477_v37 = vpack.c.bf16 %v481_v34, %v480_v36  ;;  %v3749_v39 = vpop.f32.mrb[4].mxu0 }
 0x29d   : > { %v483_v40 = vadd.f32 %v3749_v39, %v5270_v1  ;;  %v471_v43 = vpop.f32.mrb[5].mxu0 }
 0x29e   : > { %v482_v44 = vadd.f32 %v471_v43, %v5265_v0  ;;  %4478 = vmatprep.subr.bf16.mxu1 %v4477_v37 }
 0x29f   : > { %4480 = vmatpush3.bf16.msra.mxu1 %v4477_v37 }
 0x2a0   : > { %v4481_v46 = vpack.c.bf16 %v483_v40, %v482_v44 }
 0x2a2   : > { %4482 = vmatprep.subr.bf16.mxu1 %v4481_v46 }
 0x2a3   : > { %4484 = vmatpush3.bf16.msra.mxu1 %v4481_v46 }
 0x2a4   : > { %4518 = vmatprep.subr.bf16.mxu1 %v5379_v42 }
 0x2a6   : > { %3759 = vmatmul.mubr.msk.f32.vlgmr.msra.gmra.mrb[2].mxu1 %vm199_vm1, %v5280_v3 }
 0x2a7   : > { %3761 = vmatprep.mubr.msk.f32.mxu1 %vm199_vm1, %v5285_v4 }
 0x2aa   : > { %3762 = vmatmul.mubr.msk.f32.gmra.mrb[4].mxu1 %vm199_vm1, %v5294_v7 }
 0x2ac   : > { %4520 = vmatpush3.bf16.xpose.msra.mxu1 %v5379_v42 }
 0x2ad   : > { %4522 = vmatprep.subr.bf16.mxu1 %v5403_v48 }
 0x2b4   : > { %4524 = vmatpush3.bf16.xpose.msra.mxu1 %v5403_v48 }
 0x2b5   : > { %4526 = vmatprep.subr.bf16.mxu1 %v5425_v54 }
 0x2bc   : > { %4528 = vmatpush3.bf16.xpose.msra.mxu1 %v5425_v54 }
 0x2bd   : > { %4530 = vmatprep.subr.bf16.mxu1 %v5445_v60 }
 0x2c4   : > { %4532 = vmatpush3.bf16.xpose.msra.mxu1 %v5445_v60 }
 0x2c5   : > { %4534 = vmatprep.subr.bf16.mxu1 %v5465_v9 }
 0x2cc   : > { %4536 = vmatpush3.bf16.xpose.msra.mxu1 %v5465_v9 }
 0x2cd   : > { %4538 = vmatprep.subr.bf16.mxu1 %v5485_v15 }
 0x2d4   : > { %4540 = vmatpush3.bf16.xpose.msra.mxu1 %v5485_v15 }
 0x2d5   : > { %4542 = vmatprep.subr.bf16.mxu1 %v5505_v21 }
 0x2dc   : > { %4544 = vmatpush3.bf16.xpose.msra.mxu1 %v5505_v21 }
 0x2dd   : > { %4546 = vmatprep.subr.bf16.mxu1 %v5516_v28 }
 0x2e4   : > { %4548 = vmatpush3.bf16.xpose.msra.mxu1 %v5516_v28 }
 0x2e5   : > { %4558 = vmatprep.subr.bf16.mxu1 %v5365_v38 }
 0x379   : > { %v3760_v47 = vpop.f32.mrb[2].mxu1 }
 0x37a   : > { %v550_v49 = vpop.f32.mrb[3].mxu1 }
 0x37b   : > { %3796 = vmatprep.mubr.f32.mxu0 %v550_v49 }
 0x37c   : > { %3797 = vmatmul.mubr.f32.vlgmr.msra.gmra.mrb[6].mxu0 %v3760_v47 }
 0x37d   : > { %v3763_v50 = vpop.f32.mrb[4].mxu1  ;;  %3842 = vmatprep.mubr.msk.f32.mxu0 %vm199_vm1, %v5275_v2 }
 0x37e   : > { %v560_v52 = vpop.f32.mrb[5].mxu1 }
 0x37f   : > { %3831 = vmatprep.mubr.f32.mxu1 %v560_v52 }
 0x380   : > { %3832 = vmatmul.mubr.f32.vlgmr.msra.gmra.mrb[6].mxu1 %v3763_v50 }
 0x381   : > { %4560 = vmatpush3.bf16.xpose.msra.mxu1 %v5365_v38 }
 0x382   : > { %4562 = vmatprep.subr.bf16.mxu1 %v5375_v41 }
 0x389   : > { %4564 = vmatpush3.bf16.xpose.msra.mxu1 %v5375_v41 }
 0x38a   : > { %4566 = vmatprep.subr.bf16.mxu1 %v5389_v45 }
 0x391   : > { %4568 = vmatpush3.bf16.xpose.msra.mxu1 %v5389_v45 }
 0x392   : > { %4570 = vmatprep.subr.bf16.mxu1 %v5414_v51 }
 0x399   : > { %4572 = vmatpush3.bf16.xpose.msra.mxu1 %v5414_v51 }
 0x39a   : > { %4574 = vmatprep.subr.bf16.mxu1 %v5434_v57 }
 0x3a1   : > { %4576 = vmatpush3.bf16.xpose.msra.mxu1 %v5434_v57 }
 0x3a2   : > { %4578 = vmatprep.subr.bf16.mxu1 %v5454_v63 }
 0x3a9   : > { %4580 = vmatpush3.bf16.xpose.msra.mxu1 %v5454_v63 }
 0x3aa   : > { %4582 = vmatprep.subr.bf16.mxu1 %v5474_v12 }
 0x3b1   : > { %4584 = vmatpush3.bf16.xpose.msra.mxu1 %v5474_v12 }
 0x3b2   : > { %4586 = vmatprep.subr.bf16.mxu1 %v5494_v18 }
 0x3b9   : > { %4588 = vmatpush3.bf16.xpose.msra.mxu1 %v5494_v18 }
 0x44f   : > { %v3798_v53 = vpop.f32.mrb[6].mxu0 }
 0x450   : > { %v720_v55 = vadd.f32 %v3798_v53, %v5270_v1  ;;  %v635_v56 = vpop.f32.mrb[7].mxu0 }
 0x451   : > { %v719_v58 = vadd.f32 %v635_v56, %v5265_v0 }
 0x453   : > { %v4549_v59 = vpack.c.bf16 %v720_v55, %v719_v58  ;;  %v3833_v61 = vpop.f32.mrb[6].mxu1 }
 0x454   : > { %v722_v62 = vadd.f32 %v3833_v61, %v5270_v1  ;;  %v710_v5 = vpop.f32.mrb[7].mxu1 }
 0x455   : > { %v721_v8 = vadd.f32 %v710_v5, %v5265_v0  ;;  %4550 = vmatprep.subr.bf16.mxu0 %v4549_v59 }
 0x456   : > { %4552 = vmatpush3.bf16.msra.mxu0 %v4549_v59 }
 0x457   : > { %v4553_v10 = vpack.c.bf16 %v722_v62, %v721_v8 }
 0x459   : > { %4554 = vmatprep.subr.bf16.mxu0 %v4553_v10 }
 0x45a   : > { %4556 = vmatpush3.bf16.msra.mxu0 %v4553_v10 }
 0x45b   : > { %4590 = vmatprep.subr.bf16.mxu0 %v5379_v42 }
 0x45d   : > { %3843 = vmatmul.mubr.msk.f32.vlgmr.msra.gmra.mrb[8].mxu0 %vm199_vm1, %v5280_v3 }
 0x45e   : > { %3845 = vmatprep.mubr.msk.f32.mxu0 %vm199_vm1, %v5285_v4 }
 0x461   : > { %3846 = vmatmul.mubr.msk.f32.gmra.mrb[10].mxu0 %vm199_vm1, %v5294_v7 }
 0x463   : > { %4592 = vmatpush3.bf16.xpose.msra.mxu0 %v5379_v42 }
 0x464   : > { %4594 = vmatprep.subr.bf16.mxu0 %v5403_v48 }
 0x46b   : > { %4596 = vmatpush3.bf16.xpose.msra.mxu0 %v5403_v48 }
 0x46c   : > { %4598 = vmatprep.subr.bf16.mxu0 %v5425_v54 }
 0x473   : > { %4600 = vmatpush3.bf16.xpose.msra.mxu0 %v5425_v54 }
 0x474   : > { %4602 = vmatprep.subr.bf16.mxu0 %v5445_v60 }
 0x47b   : > { %4604 = vmatpush3.bf16.xpose.msra.mxu0 %v5445_v60 }
 0x47c   : > { %4606 = vmatprep.subr.bf16.mxu0 %v5465_v9 }
 0x483   : > { %4608 = vmatpush3.bf16.xpose.msra.mxu0 %v5465_v9 }
 0x484   : > { %4610 = vmatprep.subr.bf16.mxu0 %v5485_v15 }
 0x48b   : > { %4612 = vmatpush3.bf16.xpose.msra.mxu0 %v5485_v15 }
 0x48c   : > { %4614 = vmatprep.subr.bf16.mxu0 %v5505_v21 }
 0x493   : > { %4616 = vmatpush3.bf16.xpose.msra.mxu0 %v5505_v21 }
 0x494   : > { %4618 = vmatprep.subr.bf16.mxu0 %v5516_v28 }
 0x49b   : > { %4620 = vmatpush3.bf16.xpose.msra.mxu0 %v5516_v28 }
 0x49c   : > { %4630 = vmatprep.subr.bf16.mxu0 %v5365_v38 }
 0x530   : > { %v3844_v11 = vpop.f32.mrb[8].mxu0 }
 0x531   : > { %v789_v13 = vpop.f32.mrb[9].mxu0 }
 0x532   : > { %3880 = vmatprep.mubr.f32.mxu1 %v789_v13 }
 0x533   : > { %3881 = vmatmul.mubr.f32.vlgmr.msra.gmra.mrb[8].mxu1 %v3844_v11 }
 0x534   : > { %v3847_v14 = vpop.f32.mrb[10].mxu0  ;;  %3926 = vmatprep.mubr.msk.f32.mxu1 %vm199_vm1, %v5275_v2 }
 0x535   : > { %v799_v16 = vpop.f32.mrb[11].mxu0 }
 0x536   : > { %3915 = vmatprep.mubr.f32.mxu0 %v799_v16 }
 0x537   : > { %3916 = vmatmul.mubr.f32.vlgmr.msra.gmra.mrb[12].mxu0 %v3847_v14 }
 0x538   : > { %4632 = vmatpush3.bf16.xpose.msra.mxu0 %v5365_v38 }
 0x539   : > { %4634 = vmatprep.subr.bf16.mxu0 %v5375_v41 }
 0x540   : > { %4636 = vmatpush3.bf16.xpose.msra.mxu0 %v5375_v41 }
 0x541   : > { %4638 = vmatprep.subr.bf16.mxu0 %v5389_v45 }
 0x548   : > { %4640 = vmatpush3.bf16.xpose.msra.mxu0 %v5389_v45 }
 0x549   : > { %4642 = vmatprep.subr.bf16.mxu0 %v5414_v51 }
 0x550   : > { %4644 = vmatpush3.bf16.xpose.msra.mxu0 %v5414_v51 }
 0x551   : > { %4646 = vmatprep.subr.bf16.mxu0 %v5434_v57 }
 0x558   : > { %4648 = vmatpush3.bf16.xpose.msra.mxu0 %v5434_v57 }
 0x559   : > { %4650 = vmatprep.subr.bf16.mxu0 %v5454_v63 }
 0x560   : > { %4652 = vmatpush3.bf16.xpose.msra.mxu0 %v5454_v63 }
 0x561   : > { %4654 = vmatprep.subr.bf16.mxu0 %v5474_v12 }
 0x568   : > { %4656 = vmatpush3.bf16.xpose.msra.mxu0 %v5474_v12 }
 0x569   : > { %4658 = vmatprep.subr.bf16.mxu0 %v5494_v18 }
 0x570   : > { %4660 = vmatpush3.bf16.xpose.msra.mxu0 %v5494_v18 }
 0x606   : > { %v3882_v17 = vpop.f32.mrb[8].mxu1 }
 0x607   : > { %v959_v19 = vadd.f32 %v3882_v17, %v5270_v1  ;;  %v874_v20 = vpop.f32.mrb[9].mxu1 }
 0x608   : > { %v958_v24 = vadd.f32 %v874_v20, %v5265_v0 }
 0x60a   : > { %v4621_v25 = vpack.c.bf16 %v959_v19, %v958_v24  ;;  %v3917_v29 = vpop.f32.mrb[12].mxu0 }
 0x60b   : > { %v961_v30 = vadd.f32 %v3917_v29, %v5270_v1  ;;  %v949_v31 = vpop.f32.mrb[13].mxu0 }
 0x60c   : > { %v960_v32 = vadd.f32 %v949_v31, %v5265_v0  ;;  %4622 = vmatprep.subr.bf16.mxu1 %v4621_v25 }
 0x60d   : > { %4624 = vmatpush3.bf16.msra.mxu1 %v4621_v25 }
 0x60e   : > { %v4625_v33 = vpack.c.bf16 %v961_v30, %v960_v32 }
 0x610   : > { %4626 = vmatprep.subr.bf16.mxu1 %v4625_v33 }
 0x611   : > { %4628 = vmatpush3.bf16.msra.mxu1 %v4625_v33 }
 0x612   : > { %4662 = vmatprep.subr.bf16.mxu1 %v5379_v42 }
 0x614   : > { %3927 = vmatmul.mubr.msk.f32.vlgmr.msra.gmra.mrb[10].mxu1 %vm199_vm1, %v5280_v3 }
 0x615   : > { %3929 = vmatprep.mubr.msk.f32.mxu1 %vm199_vm1, %v5285_v4 }
 0x618   : > { %3930 = vmatmul.mubr.msk.f32.gmra.mrb[12].mxu1 %vm199_vm1, %v5294_v7 }
 0x61a   : > { %4664 = vmatpush3.bf16.xpose.msra.mxu1 %v5379_v42 }
 0x61b   : > { %4666 = vmatprep.subr.bf16.mxu1 %v5403_v48 }
 0x622   : > { %4668 = vmatpush3.bf16.xpose.msra.mxu1 %v5403_v48 }
 0x623   : > { %4670 = vmatprep.subr.bf16.mxu1 %v5425_v54 }
 0x62a   : > { %4672 = vmatpush3.bf16.xpose.msra.mxu1 %v5425_v54 }
 0x62b   : > { %4674 = vmatprep.subr.bf16.mxu1 %v5445_v60 }
 0x632   : > { %4676 = vmatpush3.bf16.xpose.msra.mxu1 %v5445_v60 }
 0x633   : > { %4678 = vmatprep.subr.bf16.mxu1 %v5465_v9 }
 0x63a   : > { %4680 = vmatpush3.bf16.xpose.msra.mxu1 %v5465_v9 }
 0x63b   : > { %4682 = vmatprep.subr.bf16.mxu1 %v5485_v15 }
 0x642   : > { %4684 = vmatpush3.bf16.xpose.msra.mxu1 %v5485_v15 }
 0x643   : > { %4686 = vmatprep.subr.bf16.mxu1 %v5505_v21 }
 0x64a   : > { %4688 = vmatpush3.bf16.xpose.msra.mxu1 %v5505_v21 }
 0x64b   : > { %4690 = vmatprep.subr.bf16.mxu1 %v5516_v28 }
 0x652   : > { %4692 = vmatpush3.bf16.xpose.msra.mxu1 %v5516_v28 }
 0x653   : > { %4702 = vmatprep.subr.bf16.mxu1 %v5365_v38 }
 0x6e7   : > { %v3928_v34 = vpop.f32.mrb[10].mxu1 }
 0x6e8   : > { %v1028_v35 = vpop.f32.mrb[11].mxu1 }
 0x6e9   : > { %3964 = vmatprep.mubr.f32.mxu0 %v1028_v35 }
 0x6ea   : > { %3965 = vmatmul.mubr.f32.vlgmr.msra.gmra.mrb[14].mxu0 %v3928_v34 }
 0x6eb   : > { %v3931_v36 = vpop.f32.mrb[12].mxu1  ;;  %4010 = vmatprep.mubr.msk.f32.mxu0 %vm199_vm1, %v5275_v2 }
 0x6ec   : > { %v1038_v37 = vpop.f32.mrb[13].mxu1 }
 0x6ed   : > { %3999 = vmatprep.mubr.f32.mxu1 %v1038_v37 }
 0x6ee   : > { %4000 = vmatmul.mubr.f32.vlgmr.msra.gmra.mrb[14].mxu1 %v3931_v36 }
 0x6ef   : > { %4704 = vmatpush3.bf16.xpose.msra.mxu1 %v5365_v38 }
 0x6f0   : > { %4706 = vmatprep.subr.bf16.mxu1 %v5375_v41 }
 0x6f7   : > { %4708 = vmatpush3.bf16.xpose.msra.mxu1 %v5375_v41 }
 0x6f8   : > { %4710 = vmatprep.subr.bf16.mxu1 %v5389_v45 }
 0x6ff   : > { %4712 = vmatpush3.bf16.xpose.msra.mxu1 %v5389_v45 }
 0x700   : > { %4714 = vmatprep.subr.bf16.mxu1 %v5414_v51 }
 0x707   : > { %4716 = vmatpush3.bf16.xpose.msra.mxu1 %v5414_v51 }
 0x708   : > { %4718 = vmatprep.subr.bf16.mxu1 %v5434_v57 }
 0x70f   : > { %4720 = vmatpush3.bf16.xpose.msra.mxu1 %v5434_v57 }
 0x710   : > { %4722 = vmatprep.subr.bf16.mxu1 %v5454_v63 }
 0x717   : > { %4724 = vmatpush3.bf16.xpose.msra.mxu1 %v5454_v63 }
 0x718   : > { %4726 = vmatprep.subr.bf16.mxu1 %v5474_v12 }
 0x71f   : > { %4728 = vmatpush3.bf16.xpose.msra.mxu1 %v5474_v12 }
 0x720   : > { %4730 = vmatprep.subr.bf16.mxu1 %v5494_v18 }
 0x727   : > { %4732 = vmatpush3.bf16.xpose.msra.mxu1 %v5494_v18 }
 0x7bd   : > { %v3966_v39 = vpop.f32.mrb[14].mxu0 }
 0x7be   : > { %v1198_v40 = vadd.f32 %v3966_v39, %v5270_v1  ;;  %v1113_v43 = vpop.f32.mrb[15].mxu0 }
 0x7bf   : > { %v1197_v44 = vadd.f32 %v1113_v43, %v5265_v0 }
 0x7c1   : > { %v4693_v46 = vpack.c.bf16 %v1198_v40, %v1197_v44  ;;  %v4001_v47 = vpop.f32.mrb[14].mxu1 }
 0x7c2   : > { %v1200_v49 = vadd.f32 %v4001_v47, %v5270_v1  ;;  %v1188_v50 = vpop.f32.mrb[15].mxu1 }
 0x7c3   : > { %v1199_v52 = vadd.f32 %v1188_v50, %v5265_v0  ;;  %4694 = vmatprep.subr.bf16.mxu0 %v4693_v46 }
 0x7c4   : > { %4696 = vmatpush3.bf16.msra.mxu0 %v4693_v46 }
 0x7c5   : > { %v4697_v53 = vpack.c.bf16 %v1200_v49, %v1199_v52 }
 0x7c7   : > { %4698 = vmatprep.subr.bf16.mxu0 %v4697_v53 }
 0x7c8   : > { %4700 = vmatpush3.bf16.msra.mxu0 %v4697_v53 }
 0x7c9   : > { %4734 = vmatprep.subr.bf16.mxu0 %v5379_v42 }
 0x7cb   : > { %4011 = vmatmul.mubr.msk.f32.vlgmr.msra.gmra.mrb[16].mxu0 %vm199_vm1, %v5280_v3 }
 0x7cc   : > { %4013 = vmatprep.mubr.msk.f32.mxu0 %vm199_vm1, %v5285_v4 }
 0x7cf   : > { %4014 = vmatmul.mubr.msk.f32.gmra.mrb[18].mxu0 %vm199_vm1, %v5294_v7 }
 0x7d1   : > { %4736 = vmatpush3.bf16.xpose.msra.mxu0 %v5379_v42 }
 0x7d2   : > { %4738 = vmatprep.subr.bf16.mxu0 %v5403_v48 }
 0x7d9   : > { %4740 = vmatpush3.bf16.xpose.msra.mxu0 %v5403_v48 }
 0x7da   : > { %4742 = vmatprep.subr.bf16.mxu0 %v5425_v54 }
 0x7e1   : > { %4744 = vmatpush3.bf16.xpose.msra.mxu0 %v5425_v54 }
 0x7e2   : > { %4746 = vmatprep.subr.bf16.mxu0 %v5445_v60 }
 0x7e9   : > { %4748 = vmatpush3.bf16.xpose.msra.mxu0 %v5445_v60 }
 0x7ea   : > { %4750 = vmatprep.subr.bf16.mxu0 %v5465_v9 }
 0x7f1   : > { %4752 = vmatpush3.bf16.xpose.msra.mxu0 %v5465_v9 }
 0x7f2   : > { %4754 = vmatprep.subr.bf16.mxu0 %v5485_v15 }
 0x7f9   : > { %4756 = vmatpush3.bf16.xpose.msra.mxu0 %v5485_v15 }
 0x7fa   : > { %4758 = vmatprep.subr.bf16.mxu0 %v5505_v21 }
 0x801   : > { %4760 = vmatpush3.bf16.xpose.msra.mxu0 %v5505_v21 }
 0x802   : > { %4762 = vmatprep.subr.bf16.mxu0 %v5516_v28 }
 0x809   : > { %4764 = vmatpush3.bf16.xpose.msra.mxu0 %v5516_v28 }
 0x80a   : > { %4774 = vmatprep.subr.bf16.mxu0 %v5365_v38 }
 0x89e   : > { %v4012_v55 = vpop.f32.mrb[16].mxu0 }
 0x89f   : > { %v1267_v56 = vpop.f32.mrb[17].mxu0 }
 0x8a0   : > { %4048 = vmatprep.mubr.f32.mxu1 %v1267_v56 }
 0x8a1   : > { %4049 = vmatmul.mubr.f32.vlgmr.msra.gmra.mrb[16].mxu1 %v4012_v55 }
 0x8a2   : > { %v4015_v58 = vpop.f32.mrb[18].mxu0  ;;  %4094 = vmatprep.mubr.msk.f32.mxu1 %vm199_vm1, %v5275_v2 }
 0x8a3   : > { %v1277_v59 = vpop.f32.mrb[19].mxu0 }
 0x8a4   : > { %4083 = vmatprep.mubr.f32.mxu0 %v1277_v59 }
 0x8a5   : > { %4084 = vmatmul.mubr.f32.vlgmr.msra.gmra.mrb[20].mxu0 %v4015_v58 }
 0x8a6   : > { %4776 = vmatpush3.bf16.xpose.msra.mxu0 %v5365_v38 }
 0x8a7   : > { %4778 = vmatprep.subr.bf16.mxu0 %v5375_v41 }
 0x8ae   : > { %4780 = vmatpush3.bf16.xpose.msra.mxu0 %v5375_v41 }
 0x8af   : > { %4782 = vmatprep.subr.bf16.mxu0 %v5389_v45 }
 0x8b6   : > { %4784 = vmatpush3.bf16.xpose.msra.mxu0 %v5389_v45 }
 0x8b7   : > { %4786 = vmatprep.subr.bf16.mxu0 %v5414_v51 }
 0x8be   : > { %4788 = vmatpush3.bf16.xpose.msra.mxu0 %v5414_v51 }
 0x8bf   : > { %4790 = vmatprep.subr.bf16.mxu0 %v5434_v57 }
 0x8c6   : > { %4792 = vmatpush3.bf16.xpose.msra.mxu0 %v5434_v57 }
 0x8c7   : > { %4794 = vmatprep.subr.bf16.mxu0 %v5454_v63 }
 0x8ce   : > { %4796 = vmatpush3.bf16.xpose.msra.mxu0 %v5454_v63 }
 0x8cf   : > { %4798 = vmatprep.subr.bf16.mxu0 %v5474_v12 }
 0x8d6   : > { %4800 = vmatpush3.bf16.xpose.msra.mxu0 %v5474_v12 }
 0x8d7   : > { %4802 = vmatprep.subr.bf16.mxu0 %v5494_v18 }
 0x8de   : > { %4804 = vmatpush3.bf16.xpose.msra.mxu0 %v5494_v18 }
 0x974   : > { %v4050_v61 = vpop.f32.mrb[16].mxu1 }
 0x975   : > { %v1437_v62 = vadd.f32 %v4050_v61, %v5270_v1  ;;  %v1352_v5 = vpop.f32.mrb[17].mxu1 }
 0x976   : > { %v1436_v8 = vadd.f32 %v1352_v5, %v5265_v0 }
 0x978   : > { %v4765_v10 = vpack.c.bf16 %v1437_v62, %v1436_v8  ;;  %v4085_v11 = vpop.f32.mrb[20].mxu0 }
 0x979   : > { %v1439_v13 = vadd.f32 %v4085_v11, %v5270_v1  ;;  %v1427_v14 = vpop.f32.mrb[21].mxu0 }
 0x97a   : > { %v1438_v16 = vadd.f32 %v1427_v14, %v5265_v0  ;;  %4766 = vmatprep.subr.bf16.mxu1 %v4765_v10 }
 0x97b   : > { %4768 = vmatpush3.bf16.msra.mxu1 %v4765_v10 }
 0x97c   : > { %v4769_v17 = vpack.c.bf16 %v1439_v13, %v1438_v16 }
 0x97e   : > { %4770 = vmatprep.subr.bf16.mxu1 %v4769_v17 }
 0x97f   : > { %4772 = vmatpush3.bf16.msra.mxu1 %v4769_v17 }
 0x980   : > { %4806 = vmatprep.subr.bf16.mxu1 %v5379_v42 }
 0x982   : > { %4095 = vmatmul.mubr.msk.f32.vlgmr.msra.gmra.mrb[18].mxu1 %vm199_vm1, %v5280_v3 }
 0x983   : > { %4097 = vmatprep.mubr.msk.f32.mxu1 %vm199_vm1, %v5285_v4 }
 0x986   : > { %4098 = vmatmul.mubr.msk.f32.gmra.mrb[20].mxu1 %vm199_vm1, %v5294_v7 }
 0x988   : > { %4808 = vmatpush3.bf16.xpose.msra.mxu1 %v5379_v42 }
 0x989   : > { %4810 = vmatprep.subr.bf16.mxu1 %v5403_v48 }
 0x990   : > { %4812 = vmatpush3.bf16.xpose.msra.mxu1 %v5403_v48 }
 0x991   : > { %4814 = vmatprep.subr.bf16.mxu1 %v5425_v54 }
 0x998   : > { %4816 = vmatpush3.bf16.xpose.msra.mxu1 %v5425_v54 }
 0x999   : > { %4818 = vmatprep.subr.bf16.mxu1 %v5445_v60 }
 0x9a0   : > { %4820 = vmatpush3.bf16.xpose.msra.mxu1 %v5445_v60 }
 0x9a1   : > { %4822 = vmatprep.subr.bf16.mxu1 %v5465_v9 }
 0x9a8   : > { %4824 = vmatpush3.bf16.xpose.msra.mxu1 %v5465_v9 }
 0x9a9   : > { %4826 = vmatprep.subr.bf16.mxu1 %v5485_v15 }
 0x9b0   : > { %4828 = vmatpush3.bf16.xpose.msra.mxu1 %v5485_v15 }
 0x9b1   : > { %4830 = vmatprep.subr.bf16.mxu1 %v5505_v21 }
 0x9b8   : > { %4832 = vmatpush3.bf16.xpose.msra.mxu1 %v5505_v21 }
 0x9b9   : > { %4834 = vmatprep.subr.bf16.mxu1 %v5516_v28 }
 0x9c0   : > { %4836 = vmatpush3.bf16.xpose.msra.mxu1 %v5516_v28 }
 0x9c1   : > { %4846 = vmatprep.subr.bf16.mxu1 %v5365_v38 }
 0xa55   : > { %v4096_v19 = vpop.f32.mrb[18].mxu1 }
 0xa56   : > { %v1506_v20 = vpop.f32.mrb[19].mxu1 }
 0xa57   : > { %4132 = vmatprep.mubr.f32.mxu0 %v1506_v20 }
 0xa58   : > { %4133 = vmatmul.mubr.f32.vlgmr.msra.gmra.mrb[22].mxu0 %v4096_v19 }
 0xa59   : > { %v4099_v24 = vpop.f32.mrb[20].mxu1  ;;  %4178 = vmatprep.mubr.msk.f32.mxu0 %vm199_vm1, %v5275_v2 }
 0xa5a   : > { %v1516_v25 = vpop.f32.mrb[21].mxu1 }
 0xa5b   : > { %4167 = vmatprep.mubr.f32.mxu1 %v1516_v25 }
 0xa5c   : > { %4168 = vmatmul.mubr.f32.vlgmr.msra.gmra.mrb[22].mxu1 %v4099_v24 }
 0xa5d   : > { %4848 = vmatpush3.bf16.xpose.msra.mxu1 %v5365_v38 }
 0xa5e   : > { %4850 = vmatprep.subr.bf16.mxu1 %v5375_v41 }
 0xa65   : > { %4852 = vmatpush3.bf16.xpose.msra.mxu1 %v5375_v41 }
 0xa66   : > { %4854 = vmatprep.subr.bf16.mxu1 %v5389_v45 }
 0xa6d   : > { %4856 = vmatpush3.bf16.xpose.msra.mxu1 %v5389_v45 }
 0xa6e   : > { %4858 = vmatprep.subr.bf16.mxu1 %v5414_v51 }
 0xa75   : > { %4860 = vmatpush3.bf16.xpose.msra.mxu1 %v5414_v51 }
 0xa76   : > { %4862 = vmatprep.subr.bf16.mxu1 %v5434_v57 }
 0xa7d   : > { %4864 = vmatpush3.bf16.xpose.msra.mxu1 %v5434_v57 }
 0xa7e   : > { %4866 = vmatprep.subr.bf16.mxu1 %v5454_v63 }
 0xa85   : > { %4868 = vmatpush3.bf16.xpose.msra.mxu1 %v5454_v63 }
 0xa86   : > { %4870 = vmatprep.subr.bf16.mxu1 %v5474_v12 }
 0xa8d   : > { %4872 = vmatpush3.bf16.xpose.msra.mxu1 %v5474_v12 }
 0xa8e   : > { %4874 = vmatprep.subr.bf16.mxu1 %v5494_v18 }
 0xa95   : > { %4876 = vmatpush3.bf16.xpose.msra.mxu1 %v5494_v18 }
 0xb2b   : > { %v4134_v29 = vpop.f32.mrb[22].mxu0 }
 0xb2c   : > { %v1676_v30 = vadd.f32 %v4134_v29, %v5270_v1  ;;  %v1591_v31 = vpop.f32.mrb[23].mxu0 }
 0xb2d   : > { %v1675_v32 = vadd.f32 %v1591_v31, %v5265_v0 }
 0xb2f   : > { %v4837_v33 = vpack.c.bf16 %v1676_v30, %v1675_v32  ;;  %v4169_v34 = vpop.f32.mrb[22].mxu1 }
 0xb30   : > { %v1678_v35 = vadd.f32 %v4169_v34, %v5270_v1  ;;  %v1666_v36 = vpop.f32.mrb[23].mxu1 }
 0xb31   : > { %v1677_v37 = vadd.f32 %v1666_v36, %v5265_v0  ;;  %4838 = vmatprep.subr.bf16.mxu0 %v4837_v33 }
 0xb32   : > { %4840 = vmatpush3.bf16.msra.mxu0 %v4837_v33 }
 0xb33   : > { %v4841_v39 = vpack.c.bf16 %v1678_v35, %v1677_v37 }
 0xb35   : > { %4842 = vmatprep.subr.bf16.mxu0 %v4841_v39 }
 0xb36   : > { %4844 = vmatpush3.bf16.msra.mxu0 %v4841_v39 }
 0xb37   : > { %4878 = vmatprep.subr.bf16.mxu0 %v5379_v42 }
 0xb39   : > { %4179 = vmatmul.mubr.msk.f32.vlgmr.msra.gmra.mrb[24].mxu0 %vm199_vm1, %v5280_v3 }
 0xb3a   : > { %4181 = vmatprep.mubr.msk.f32.mxu0 %vm199_vm1, %v5285_v4 }
 0xb3d   : > { %4182 = vmatmul.mubr.msk.f32.gmra.mrb[26].mxu0 %vm199_vm1, %v5294_v7 }
 0xb3f   : > { %4880 = vmatpush3.bf16.xpose.msra.mxu0 %v5379_v42 }
 0xb40   : > { %4882 = vmatprep.subr.bf16.mxu0 %v5403_v48 }
 0xb47   : > { %4884 = vmatpush3.bf16.xpose.msra.mxu0 %v5403_v48 }
 0xb48   : > { %4886 = vmatprep.subr.bf16.mxu0 %v5425_v54 }
 0xb4f   : > { %4888 = vmatpush3.bf16.xpose.msra.mxu0 %v5425_v54 }
 0xb50   : > { %4890 = vmatprep.subr.bf16.mxu0 %v5445_v60 }
 0xb57   : > { %4892 = vmatpush3.bf16.xpose.msra.mxu0 %v5445_v60 }
 0xb58   : > { %4894 = vmatprep.subr.bf16.mxu0 %v5465_v9 }
 0xb5f   : > { %4896 = vmatpush3.bf16.xpose.msra.mxu0 %v5465_v9 }
 0xb60   : > { %4898 = vmatprep.subr.bf16.mxu0 %v5485_v15 }
 0xb67   : > { %4900 = vmatpush3.bf16.xpose.msra.mxu0 %v5485_v15 }
 0xb68   : > { %4902 = vmatprep.subr.bf16.mxu0 %v5505_v21 }
 0xb6f   : > { %4904 = vmatpush3.bf16.xpose.msra.mxu0 %v5505_v21 }
 0xb70   : > { %4906 = vmatprep.subr.bf16.mxu0 %v5516_v28 }
 0xb77   : > { %4908 = vmatpush3.bf16.xpose.msra.mxu0 %v5516_v28 }
 0xb78   : > { %4918 = vmatprep.subr.bf16.mxu0 %v5365_v38 }
 0xc0c   : > { %v4180_v40 = vpop.f32.mrb[24].mxu0 }
 0xc0d   : > { %v1745_v43 = vpop.f32.mrb[25].mxu0 }
 0xc0e   : > { %4216 = vmatprep.mubr.f32.mxu1 %v1745_v43 }
 0xc0f   : > { %4217 = vmatmul.mubr.f32.vlgmr.msra.gmra.mrb[24].mxu1 %v4180_v40 }
 0xc10   : > { %v4183_v44 = vpop.f32.mrb[26].mxu0  ;;  %4262 = vmatprep.mubr.msk.f32.mxu1 %vm199_vm1, %v5275_v2 }
 0xc11   : > { %v1755_v46 = vpop.f32.mrb[27].mxu0 }
 0xc12   : > { %4251 = vmatprep.mubr.f32.mxu0 %v1755_v46 }
 0xc13   : > { %4252 = vmatmul.mubr.f32.vlgmr.msra.gmra.mrb[28].mxu0 %v4183_v44 }
 0xc14   : > { %4920 = vmatpush3.bf16.xpose.msra.mxu0 %v5365_v38 }
 0xc15   : > { %4922 = vmatprep.subr.bf16.mxu0 %v5375_v41 }
 0xc1c   : > { %4924 = vmatpush3.bf16.xpose.msra.mxu0 %v5375_v41 }
 0xc1d   : > { %4926 = vmatprep.subr.bf16.mxu0 %v5389_v45 }
 0xc24   : > { %4928 = vmatpush3.bf16.xpose.msra.mxu0 %v5389_v45 }
 0xc25   : > { %4930 = vmatprep.subr.bf16.mxu0 %v5414_v51 }
 0xc2c   : > { %4932 = vmatpush3.bf16.xpose.msra.mxu0 %v5414_v51 }
 0xc2d   : > { %4934 = vmatprep.subr.bf16.mxu0 %v5434_v57 }
 0xc34   : > { %4936 = vmatpush3.bf16.xpose.msra.mxu0 %v5434_v57 }
 0xc35   : > { %4938 = vmatprep.subr.bf16.mxu0 %v5454_v63 }
 0xc3c   : > { %4940 = vmatpush3.bf16.xpose.msra.mxu0 %v5454_v63 }
 0xc3d   : > { %4942 = vmatprep.subr.bf16.mxu0 %v5474_v12 }
 0xc44   : > { %4944 = vmatpush3.bf16.xpose.msra.mxu0 %v5474_v12 }
 0xc45   : > { %4946 = vmatprep.subr.bf16.mxu0 %v5494_v18 }
 0xc4c   : > { %4948 = vmatpush3.bf16.xpose.msra.mxu0 %v5494_v18 }
 0xce2   : > { %v4218_v38 = vpop.f32.mrb[24].mxu1 }
 0xce3   : > { %v1915_v41 = vadd.f32 %v4218_v38, %v5270_v1  ;;  %v1830_v45 = vpop.f32.mrb[25].mxu1 }
 0xce4   : > { %v1914_v51 = vadd.f32 %v1830_v45, %v5265_v0 }
 0xce6   : > { %v4909_v47 = vpack.c.bf16 %v1915_v41, %v1914_v51  ;;  %v4253_v57 = vpop.f32.mrb[28].mxu0 }
 0xce7   : > { %v1917_v49 = vadd.f32 %v4253_v57, %v5270_v1  ;;  %v1905_v50 = vpop.f32.mrb[29].mxu0 }
 0xce8   : > { %v1916_v63 = vadd.f32 %v1905_v50, %v5265_v0  ;;  %4910 = vmatprep.subr.bf16.mxu1 %v4909_v47 }
 0xce9   : > { %4912 = vmatpush3.bf16.msra.mxu1 %v4909_v47 }
 0xcea   : > { %v4913_v12 = vpack.c.bf16 %v1917_v49, %v1916_v63 }
 0xcec   : > { %4914 = vmatprep.subr.bf16.mxu1 %v4913_v12 }
 0xced   : > { %4916 = vmatpush3.bf16.msra.mxu1 %v4913_v12 }
 0xcee   : > { %4950 = vmatprep.subr.bf16.mxu1 %v5379_v42 }
 0xcf0   : > { %4263 = vmatmul.mubr.msk.f32.vlgmr.msra.gmra.mrb[26].mxu1 %vm199_vm1, %v5280_v3 }
 0xcf1   : > { %4265 = vmatprep.mubr.msk.f32.mxu1 %vm199_vm1, %v5285_v4 }
 0xcf4   : > { %4266 = vmatmul.mubr.msk.f32.gmra.mrb[28].mxu1 %vm199_vm1, %v5294_v7 }
 0xcf6   : > { %4952 = vmatpush3.bf16.xpose.msra.mxu1 %v5379_v42 }
 0xcf7   : > { %4954 = vmatprep.subr.bf16.mxu1 %v5403_v48 }
 0xcfe   : > { %4956 = vmatpush3.bf16.xpose.msra.mxu1 %v5403_v48 }
 0xcff   : > { %4958 = vmatprep.subr.bf16.mxu1 %v5425_v54 }
 0xd06   : > { %4960 = vmatpush3.bf16.xpose.msra.mxu1 %v5425_v54 }
 0xd07   : > { %4962 = vmatprep.subr.bf16.mxu1 %v5445_v60 }
 0xd0e   : > { %4964 = vmatpush3.bf16.xpose.msra.mxu1 %v5445_v60 }
 0xd0f   : > { %4966 = vmatprep.subr.bf16.mxu1 %v5465_v9 }
 0xd16   : > { %4968 = vmatpush3.bf16.xpose.msra.mxu1 %v5465_v9 }
 0xd17   : > { %4970 = vmatprep.subr.bf16.mxu1 %v5485_v15 }
 0xd1e   : > { %4972 = vmatpush3.bf16.xpose.msra.mxu1 %v5485_v15 }
 0xd1f   : > { %4974 = vmatprep.subr.bf16.mxu1 %v5505_v21 }
 0xd26   : > { %4976 = vmatpush3.bf16.xpose.msra.mxu1 %v5505_v21 }
 0xd27   : > { %4978 = vmatprep.subr.bf16.mxu1 %v5516_v28 }
 0xd2e   : > { %4980 = vmatpush3.bf16.xpose.msra.mxu1 %v5516_v28 }
 0xdc3   : > { %v4264_v42 = vpop.f32.mrb[26].mxu1 }
 0xdc4   : > { %v1984_v48 = vpop.f32.mrb[27].mxu1 }
 0xdc5   : > { %4300 = vmatprep.mubr.f32.mxu0 %v1984_v48 }
 0xdc6   : > { %4301 = vmatmul.mubr.f32.vlgmr.msra.gmra.mrb[30].mxu0 %v4264_v42 }
 0xdc7   : > { %v4267_v54 = vpop.f32.mrb[28].mxu1 }
 0xdc8   : > { %v1994_v60 = vpop.f32.mrb[29].mxu1 }
 0xdc9   : > { %4335 = vmatprep.mubr.f32.mxu1 %v1994_v60 }
 0xdca   : > { %4336 = vmatmul.mubr.f32.vlgmr.msra.gmra.mrb[30].mxu1 %v4267_v54 }
 0xe99   : > { %v4302_v9 = vpop.f32.mrb[30].mxu0 }
 0xe9a   : > { %v5830_v30 = vadd.f32 %v4302_v9, %v5270_v1   ;;  %v2069_v18 = vpop.f32.mrb[31].mxu0 }
 0xe9b   : > { %v5833_v31 = vadd.f32 %v2069_v18, %v5265_v0  }
 0xe9c   : > { %v6097_v15 = vmov %v5830_v30 }
 0xe9d   : > { %v6098_v21 = vmov %v5833_v31  ;;  %v2158_v52 = vsub.f32 %v6097_v15, %v1915_v41  ;;  %v4337_v53 = vpop.f32.mrb[30].mxu1 }
 0xe9e   : > { %v2157_v28 = vsub.f32 %v6098_v21, %v1914_v51  ;;  %v5838_v55 = vadd.f32 %v4337_v53, %v5270_v1   ;;  %v2144_v56 = vpop.f32.mrb[31].mxu1 }
 0xe9f   : > { %v2162_v58 = vmul.f32 %v2158_v52, %v2158_v52  ;;  %v5841_v29 = vadd.f32 %v2144_v56, %v5265_v0  }
 0xea0   : > { %v2161_v61 = vmul.f32 %v2157_v28, %v2157_v28  ;;  %v2160_v62 = vsub.f32 %v5838_v55, %v1917_v49  ;;  %v6100_v28 = vmov %v5838_v55 }
 0xea1   : > { %v6099_v59 = vmov %v5841_v29 }
 0xea2   : > { %v2159_v5 = vsub.f32 %v6099_v59, %v1916_v63  ;;  %v2163_v8 = vadd.f32 %v2162_v58, %v2161_v61  ;;  %v2174_v10 = vmul.f32 %v2160_v62, %v2160_v62 }
 0xea4   : > { %v2173_v11 = vmul.f32 %v2159_v5, %v2159_v5  ;;  %2164 = vadd.xlane.f32.xlu0 %v2163_v8 }
 0xea6   : > { %v2175_v13 = vadd.f32 %v2174_v10, %v2173_v11 }
 0xea8   : > { %2176 = vadd.xlane.f32.xlu0 %v2175_v13 }
 0xf31   : > { %v2165_v14 = vpop.xlane.xlu0 %2164 }
 0xf32   : > { %v2166_v16 = vrot.slane %v2165_v14, 4 }
 0xf34   : > { %v2167_v17 = vadd.f32 %v2166_v16, %v2165_v14 }
 0xf35   : > { %v2177_v19 = vpop.xlane.xlu0 %2176 }
 0xf36   : > { %v2168_v20 = vrot.slane %v2167_v17, 2  ;;  %v2178_v24 = vrot.slane %v2177_v19, 4 }
 0xf38   : > { %v2179_v25 = vadd.f32 %v2178_v24, %v2177_v19  ;;  %v2169_v29 = vadd.f32 %v2168_v20, %v2167_v17 }
 0xf3a   : > { %v2180_v30 = vrot.slane %v2179_v25, 2  ;;  %v2170_v31 = vrot.slane %v2169_v29, 1 }
 0xf3c   : > { %v2181_v32 = vadd.f32 %v2180_v30, %v2179_v25  ;;  %v2171_v33 = vadd.f32 %v2170_v31, %v2169_v29  ;;  %v6101_v29 = vmov %v6099_v59  ;;  %v6102_v30 = vmov %v6097_v15 }
 0xf3d   : > { %v6103_v31 = vmov %v6098_v21 }
 0xf3e   : > { %5017 = vpush %v2171_v33  ;;  %v2182_v34 = vrot.slane %v2181_v32, 1 }
 0xf40   : > { %v2183_v35 = vadd.f32 %v2182_v34, %v2181_v32 }
 0xf42   : > { %5019 = vpush %v2183_v35 }
 0xf6f   : > { %s5018_s30 = spop %5017 }
 0xf73   : > { %s5020_s0 = spop %5019 }
 0xf74   : > { %s2185_s17 = smax.f32 %s5020_s0, %s5018_s30 }
 0xf75   : > { %p194_p1 = scmp.ge.f32.partialorder %s2185_s17, 1e-10 }
 0xf77   : > { %p195_p2 = pnand %p194_p1, %p193_p0 }
 0xf78   :  { %v4981_v36 = vpack.c.bf16 (%p195_p2), %v6097_v15, %v6098_v21  ;;  %v4985_v37 = vpack.c.bf16 (%p195_p2), %v5838_v55, %v6099_v59  ;;  %v2187_v39 = vld [vmem:[%s6076_s3] sm:$0xff] (%p195_p2)  ;;  %5068 = vset.pattern.permute.xlu0 (%p195_p2), %v5172_v6  ;;  %5069 = vset.pattern.permute.xlu1 (%p195_p2), %v5172_v6  ;;  %v2188_v2 = vld [vmem:[%s6076_s3 + $0x8] sm:$0xff] (%p195_p2)  ;;  %v2415_v40 = vld [vmem:[%s6080_s7 + $0x10] sm:$0xff] (%p195_p2)  ;;  %vm5174_vm10 = vmmov (%p195_p2), 0   ;;  %s5176_s27 = smov (%p195_p2), [#allocation2]  }
 0xf79   :  { %198 = sbr.rel (!%p195_p2) target bundleno = 229 (0xe5), region = 98  ;;  %4342 = vmatprep.mubr.msk.f32.mxu0 (%p195_p2), %vm88_vm0, %v2187_v39  ;;  %4349 = vmatprep.mubr.msk.f32.mxu1 (%p195_p2), %vm88_vm0, %v2187_v39  ;;  %v2189_v0 = vld [vmem:[%s6077_s4] sm:$0xff] (%p195_p2)  ;;  %v2190_v3 = vld [vmem:[%s6077_s4 + $0x8] sm:$0xff] (%p195_p2)  ;;  %v2416_v43 = vld [vmem:[%s6080_s7 + $0x18] sm:$0xff] (%p195_p2)  ;;  %s3130_s3 = sshll.u32 (%p195_p2), %s5176_s27, 4  ;;  %s3131_s3 = int_to_ptr.vmem [resolvable:$true] %s3130_s3 }
 0xf7a   :  { %4982 = vmatprep.subr.bf16.mxu0 (%p195_p2), %v4981_v36  ;;  %4986 = vmatprep.subr.bf16.mxu1 (%p195_p2), %v4985_v37  ;;  %v2191_v1 = vld [vmem:[%s6078_s5] sm:$0xff] (%p195_p2)  ;;  %v2192_v4 = vld [vmem:[%s6078_s5 + $0x8] sm:$0xff] (%p195_p2)  ;;  %v2540_v45 = vld [vmem:[%s6085_s12 + $0x10] sm:$0xff] (%p195_p2)  ;;  %s5108_s28 = scalar_lea.vmem (%p195_p2), %s3131_s3, 128  ;;  %p5113_p4 = scmp.lt.s32.totalorder (%p195_p2), %s3131_s3, %s3131_s3 }
 0xf7b   :  { %4984 = vmatpush3.bf16.msra.mxu0 (%p195_p2), %v4981_v36  ;;  %4988 = vmatpush3.bf16.msra.mxu1 (%p195_p2), %v4985_v37  ;;  %v2413_v6 = vld [vmem:[%s6080_s7] sm:$0xff] (%p195_p2)  ;;  %v2414_v7 = vld [vmem:[%s6080_s7 + $0x8] sm:$0xff] (%p195_p2)  ;;  %v2541_v51 = vld [vmem:[%s6085_s12 + $0x18] sm:$0xff] (%p195_p2)  ;;  %p5109_p3 = scmp.ne.s32.totalorder (%p195_p2), %s3131_s3, %s5108_s28  ;;  %p5114_p5 = scmp.lt.s32.totalorder (%p195_p2), %s5108_s28, %s5108_s28 }
 0xf7c   :  { %2195 = vperm.xlu0 (%p195_p2), %5068, %v2189_v0   ;;  %2288 = vperm.xlu1 (%p195_p2), %5069, %v2191_v1   ;;  %v2538_v44 = vld [vmem:[%s6085_s12] sm:$0xff] (%p195_p2)  ;;  %v2539_v46 = vld [vmem:[%s6085_s12 + $0x8] sm:$0xff] (%p195_p2)  ;;  %v2568_v47 = vld [vmem:[%s6086_s13 + $0x10] sm:$0xff] (%p195_p2) }
 0xf7d   :  { %v2566_v38 = vld [vmem:[%s6086_s13] sm:$0xff] (%p195_p2)  ;;  %v2567_v41 = vld [vmem:[%s6086_s13 + $0x8] sm:$0xff] (%p195_p2)  ;;  %v2569_v57 = vld [vmem:[%s6086_s13 + $0x18] sm:$0xff] (%p195_p2)  ;;  %p5115_p6 = por (%p195_p2), %p5114_p5, %p5113_p4 }
 0xf7e   :  { %4343 = vmatmul.mubr.msk.f32.vlgmr.msra.gmra.mrb[0].mxu0 (%p195_p2), %vm88_vm0, %v2188_v2  ;;  %4350 = vmatmul.mubr.msk.f32.vlgmr.msra.gmra.mrb[0].mxu1 (%p195_p2), %vm88_vm0, %v2188_v2  ;;  %v2622_v49 = vld [vmem:[%s6084_s11] sm:$0xff] (%p195_p2)  ;;  %v2623_v50 = vld [vmem:[%s6084_s11 + $0x8] sm:$0xff] (%p195_p2)  ;;  %v2624_v63 = vld [vmem:[%s6084_s11 + $0x10] sm:$0xff] (%p195_p2) }
 0xf7f   :  { %v2625_v12 = vld [vmem:[%s6084_s11 + $0x18] sm:$0xff] (%p195_p2)  ;;  %v3226_v42 = vld [vmem:[%s6085_s12 + $0x20] sm:$0xff] (%p195_p2)  ;;  %v3227_v48 = vld [vmem:[%s6085_s12 + $0x28] sm:$0xff] (%p195_p2)  ;;  %p5116_p7 = pnand (%p195_p2), %p5115_p6, %p5109_p3 }
 0xf80   :  { %2200 = vperm.xlu0 %5068, %v2190_v3   ;;  %2293 = vperm.xlu1 %5069, %v2192_v4   ;;  %v3230_v54 = vld [vmem:[%s6086_s13 + $0x20] sm:$0xff]  ;;  %v3231_v60 = vld [vmem:[%s6086_s13 + $0x28] sm:$0xff]  ;;  %v3228_v9 = vld [vmem:[%s6085_s12 + $0x30] sm:$0xff] }
 0xf81   :  { %v3229_v18 = vld [vmem:[%s6085_s12 + $0x38] sm:$0xff]  ;;  %v3232_v52 = vld [vmem:[%s6086_s13 + $0x30] sm:$0xff]  ;;  %v3242_v53 = vld [vmem:[%s6084_s11 + $0x20] sm:$0xff] }
 0xf82   :  { %v3233_v28 = vld [vmem:[%s6086_s13 + $0x38] sm:$0xff]  ;;  %v3243_v56 = vld [vmem:[%s6084_s11 + $0x28] sm:$0xff]  ;;  %v3244_v58 = vld [vmem:[%s6084_s11 + $0x30] sm:$0xff] }
 0xf83   :  { %v3245_v61 = vld [vmem:[%s6084_s11 + $0x38] sm:$0xff]  ;;  %v3250_v62 = vld [vmem:[%s6085_s12 + $0x40] sm:$0xff]  ;;  %v3251_v5 = vld [vmem:[%s6085_s12 + $0x48] sm:$0xff] }
 0xf84   :  { %2419 = vperm.xlu0 %5068, %v2413_v6   ;;  %2424 = vperm.xlu1 %5069, %v2414_v7   ;;  %v3254_v8 = vld [vmem:[%s6086_s13 + $0x40] sm:$0xff]  ;;  %v3255_v10 = vld [vmem:[%s6086_s13 + $0x48] sm:$0xff]  ;;  %v3252_v11 = vld [vmem:[%s6085_s12 + $0x50] sm:$0xff] }
 0xf85   :  { %v3253_v13 = vld [vmem:[%s6085_s12 + $0x58] sm:$0xff]  ;;  %v3256_v14 = vld [vmem:[%s6086_s13 + $0x50] sm:$0xff]  ;;  %v3044_v17 = vld [vmem:[%s6088_s15] sm:$0xff] }
 0xf86   :  { %v3257_v16 = vld [vmem:[%s6086_s13 + $0x58] sm:$0xff]  ;;  %v2409_v19 = vld [vmem:[%s6079_s6] sm:$0xff] }
 0xf87   :  { %4356 = vmatprep.mubr.msk.f32.mxu0 %vm88_vm0, %v2409_v19 }
 0xf88   :  { %2429 = vperm.xlu0 %5068, %v2415_v40   ;;  %2434 = vperm.xlu1 %5069, %v2416_v43  }
 0xf8c   :  { %2544 = vperm.xlu0 %5068, %v2538_v44   ;;  %2549 = vperm.xlu1 %5069, %v2539_v46  }
 0xf90   :  { %2572 = vperm.xlu0 %5068, %v2566_v38   ;;  %2577 = vperm.xlu1 %5069, %v2567_v41  }
 0xf94   :  { %2554 = vperm.xlu0 %5068, %v2540_v45   ;;  %2559 = vperm.xlu1 %5069, %v2541_v51  }
 0xf98   :  { %2582 = vperm.xlu0 %5068, %v2568_v47   ;;  %2587 = vperm.xlu1 %5069, %v2569_v57  }
 0xf9c   :  { %2628 = vperm.xlu0 %5068, %v2622_v49   ;;  %2633 = vperm.xlu1 %5069, %v2623_v50  }
 0xfa0   :  { %2638 = vperm.xlu0 %5068, %v2624_v63   ;;  %2643 = vperm.xlu1 %5069, %v2625_v12  }
 0xfa4   :  { %2755 = vperm.xlu0 %5068, %v3226_v42   ;;  %2760 = vperm.xlu1 %5069, %v3227_v48  }
 0xfa8   :  { %2784 = vperm.xlu0 %5068, %v3230_v54   ;;  %2789 = vperm.xlu1 %5069, %v3231_v60  }
 0xfac   :  { %2765 = vperm.xlu0 %5068, %v3228_v9   ;;  %2770 = vperm.xlu1 %5069, %v3229_v18  }
 0xfb0   :  { %2794 = vperm.xlu0 %5068, %v3232_v52   ;;  %2799 = vperm.xlu1 %5069, %v3233_v28  }
 0xfb4   :  { %2842 = vperm.xlu0 %5068, %v3242_v53   ;;  %2847 = vperm.xlu1 %5069, %v3243_v56  }
 0xfb8   :  { %2852 = vperm.xlu0 %5068, %v3244_v58   ;;  %2857 = vperm.xlu1 %5069, %v3245_v61  }
 0xfbc   :  { %2968 = vperm.xlu0 %5068, %v3250_v62   ;;  %2973 = vperm.xlu1 %5069, %v3251_v5  }
 0xfc0   :  { %2997 = vperm.xlu0 %5068, %v3254_v8   ;;  %3002 = vperm.xlu1 %5069, %v3255_v10  }
 0xfc4   :  { %2978 = vperm.xlu0 %5068, %v3252_v11   ;;  %2983 = vperm.xlu1 %5069, %v3253_v13  }
 0xfc8   :  { %3007 = vperm.xlu0 %5068, %v3256_v14   ;;  %3012 = vperm.xlu1 %5069, %v3257_v16   ;;  %v2410_v14 = vld [vmem:[%s6079_s6 + $0x8] sm:$0xff]  ;;  %v2411_v16 = vld [vmem:[%s6079_s6 + $0x10] sm:$0xff] }
 0xfcc   :  { %3047 = vperm.xlu0 %5068, %v3044_v17  }
 0xffb   :  { %v2196_v20 = vpop.permute.xlu0 %2195  ;;  %v2289_v36 = vpop.permute.xlu1 %2288 }
 0xfff   :  { %v2201_v24 = vpop.permute.xlu0 %2200  ;;  %v2294_v39 = vpop.permute.xlu1 %2293 }
0x1051   :  { %v4344_v25 = vpop.f32.mrb[0].mxu0  ;;  %v4351_v29 = vpop.f32.mrb[0].mxu1 }
0x1052   :  { %v2281_v30 = vadd.f32 %v4344_v25, %v2201_v24  ;;  %v2377_v31 = vadd.f32 %v4351_v29, %v2201_v24  ;;  %v2275_v32 = vpop.f32.mrb[1].mxu0  ;;  %v2371_v33 = vpop.f32.mrb[1].mxu1 }
0x1053   :  { %v2276_v34 = vadd.f32 %v2275_v32, %v2196_v20  ;;  %v2372_v35 = vadd.f32 %v2371_v33, %v2196_v20 }
0x1054   :  { %5070 = vtanh.f32 %v2281_v30 }
0x1055   :  { %5072 = vtanh.f32 %v2377_v31 }
0x1056   :  { %5074 = vtanh.f32 %v2276_v34 }
0x1057   :  { %5076 = vtanh.f32 %v2372_v35 }
0x105e   :  { %v5071_v37 = vpop.eup %5070 }
0x105f   :  { %v5073_v0 = vpop.eup %5072  ;;  %v2297_v1 = vmul.f32 %v5071_v37, %v2294_v39 }
0x1060   :  { %v5075_v2 = vpop.eup %5074  ;;  %v2383_v3 = vmul.f32 %v5073_v0, %v2294_v39 }
0x1061   :  { %v5077_v4 = vpop.eup %5076  ;;  %v2296_v6 = vmul.f32 %v5075_v2, %v2289_v36 }
0x1062   :  { %v2382_v7 = vmul.f32 %v5077_v4, %v2289_v36 }
0x1063   :  { %v2298_v40 = vadd.f32 %v2297_v1, %v2296_v6 }
0x1064   :  { %v2384_v43 = vadd.f32 %v2383_v3, %v2382_v7 }
0x1065   :  { %v2299_v44 = vrot.slane %v2298_v40, 4 }
0x1066   :  { %v2385_v46 = vrot.slane %v2384_v43, 4 }
0x1067   :  { %v2300_v38 = vadd.f32 %v2299_v44, %v2298_v40 }
0x1068   :  { %v2386_v41 = vadd.f32 %v2385_v46, %v2384_v43 }
0x1069   :  { %v2301_v45 = vrot.slane %v2300_v38, 2 }
0x106a   :  { %v2387_v51 = vrot.slane %v2386_v41, 2 }
0x106b   :  { %v2302_v47 = vadd.f32 %v2301_v45, %v2300_v38 }
0x106c   :  { %v2388_v57 = vadd.f32 %v2387_v51, %v2386_v41 }
0x106d   :  { %v2303_v49 = vrot.slane %v2302_v47, 1 }
0x106e   :  { %v2389_v50 = vrot.slane %v2388_v57, 1 }
0x106f   :  { %v2304_v63 = vadd.f32 %v2303_v49, %v2302_v47 }
0x1070   :  { %v2390_v12 = vadd.f32 %v2389_v50, %v2388_v57 }
0x1072   :  { %v2391_v42 = vmax.f32 %v2304_v63, %v2390_v12 }
0x1074   :  { %v2392_v48 = vsub.f32 %v2304_v63, %v2391_v42  ;;  %v2395_v54 = vsub.f32 %v2390_v12, %v2391_v42 }
0x1076   :  { %v2393_v60 = vmul.f32 1.442695, %v2392_v48  ;;  %v2396_v9 = vmul.f32 1.442695, %v2395_v54 }
0x1078   :  { %5078 = vpow2.f32 %v2393_v60 }
0x1079   :  { %5080 = vpow2.f32 %v2396_v9 }
0x1082   :  { %v5079_v18 = vpop.eup %5078 }
0x1083   :  { %v5081_v52 = vpop.eup %5080 }
0x1084   :  { %v2398_v28 = vadd.f32 %v5081_v52, %v5079_v18 }
0x1086   :  { %5082 = vrcp.f32 %v2398_v28 }
0x1090   :  { %v5083_v53 = vpop.eup %5082 }
0x1091   :  { %v2401_v56 = vmul.f32 %v5083_v53, %v5079_v18  ;;  %v2404_v58 = vmul.f32 %v5083_v53, %v5081_v52 }
0x1093   :  { %v2402_v61 = vmul.f32 %v2401_v56, %v6098_v21  ;;  %v2403_v62 = vmul.f32 %v2401_v56, %v6097_v15  ;;  %v2405_v5 = vmul.f32 %v2404_v58, %v6099_v59  ;;  %v2406_v8 = vmul.f32 %v2404_v58, %v5838_v55  ;;  %v2412_v15 = vld [vmem:[%s6079_s6 + $0x18] sm:$0xff]  ;;  %v2618_v21 = vld [vmem:[%s6083_s10] sm:$0xff]  ;;  %v2425_v55 = vpop.permute.xlu1 %2424  ;;  %v2420_v59 = vpop.permute.xlu0 %2419 }
0x1094   :  { %4370 = vmatprep.mubr.msk.f32.mxu1 %vm199_vm1, %v2618_v21 }
0x1095   :  { %v2407_v10 = vadd.f32 %v2405_v5, %v2402_v61  ;;  %v2408_v11 = vadd.f32 %v2406_v8, %v2403_v62  ;;  %v2619_v62 = vld [vmem:[%s6083_s10 + $0x8] sm:$0xff]  ;;  %v2620_v5 = vld [vmem:[%s6083_s10 + $0x10] sm:$0xff]  ;;  %v2621_v8 = vld [vmem:[%s6083_s10 + $0x18] sm:$0xff] }
0x1097   :  { %v4989_v13 = vpack.c.bf16 %v2408_v11, %v2407_v10  ;;  %v2435_v17 = vpop.permute.xlu1 %2434  ;;  %v2430_v19 = vpop.permute.xlu0 %2429  ;;  %v3238_v10 = vld [vmem:[%s6083_s10 + $0x20] sm:$0xff] }
0x1099   :  { %4990 = vmatprep.subr.bf16.mxu0 %v4989_v13 }
0x109a   :  { %4992 = vmatpush3.bf16.msra.mxu0 %v4989_v13 }
0x109b   :  { %v2550_v20 = vpop.permute.xlu1 %2549  ;;  %v2545_v24 = vpop.permute.xlu0 %2544 }
0x109d   :  { %4357 = vmatmul.mubr.msk.f32.vlgmr.msra.gmra.mrb[2].mxu0 %vm88_vm0, %v2410_v14 }
0x109e   :  { %4359 = vmatprep.mubr.msk.f32.mxu0 %vm88_vm0, %v2411_v16 }
0x109f   :  { %v2578_v25 = vpop.permute.xlu1 %2577  ;;  %v2573_v29 = vpop.permute.xlu0 %2572 }
0x10a1   :  { %4360 = vmatmul.mubr.msk.f32.gmra.mrb[4].mxu0 %vm88_vm0, %v2412_v15 }
0x10a2   :  { %4384 = vmatprep.mubr.msk.f32.mxu0 %vm199_vm1, %v3238_v10 }
0x10a3   :  { %v2560_v35 = vpop.permute.xlu1 %2559  ;;  %v2555_v39 = vpop.permute.xlu0 %2554 }
0x10a7   :  { %v2588_v38 = vpop.permute.xlu1 %2587  ;;  %v2583_v45 = vpop.permute.xlu0 %2582 }
0x10ab   :  { %v2634_v11 = vpop.permute.xlu1 %2633  ;;  %v2629_v13 = vpop.permute.xlu0 %2628 }
0x10af   :  { %v2644_v14 = vpop.permute.xlu1 %2643  ;;  %v2639_v16 = vpop.permute.xlu0 %2638 }
0x10b3   :  { %v2761_v15 = vpop.permute.xlu1 %2760  ;;  %v2756_v21 = vpop.permute.xlu0 %2755 }
0x1170   :  { %v4358_v30 = vpop.f32.mrb[2].mxu0 }
0x1171   :  { %v2521_v31 = vadd.f32 %v4358_v30, %v2425_v55  ;;  %v2515_v32 = vpop.f32.mrb[3].mxu0  ;;  %v2790_v55 = vpop.permute.xlu1 %2789 }
0x1172   :  { %v2516_v33 = vadd.f32 %v2515_v32, %v2420_v59  ;;  %v2785_v59 = vpop.permute.xlu0 %2784 }
0x1173   :  { %v2535_v34 = vadd.f32 %v2521_v31, %v5324_v22 }
0x1174   :  { %v2534_v36 = vadd.f32 %v2516_v33, %v5328_v26  ;;  %v4361_v37 = vpop.f32.mrb[4].mxu0 }
0x1175   :  { %v2563_v0 = vmul.f32 %v2550_v20, %v2535_v34  ;;  %v2531_v1 = vadd.f32 %v4361_v37, %v2435_v17  ;;  %v2525_v2 = vpop.f32.mrb[5].mxu0 }
0x1176   :  { %v2562_v3 = vmul.f32 %v2545_v24, %v2534_v36  ;;  %v2526_v4 = vadd.f32 %v2525_v2, %v2430_v19  ;;  %v2766_v32 = vpop.permute.xlu0 %2765 }
0x1177   :  { %v2591_v6 = vadd.f32 %v2578_v25, %v2563_v0  ;;  %v2537_v7 = vadd.f32 %v2531_v1, %v5326_v23 }
0x1178   :  { %v2590_v40 = vadd.f32 %v2573_v29, %v2562_v3  ;;  %v2536_v43 = vadd.f32 %v2526_v4, %v5330_v27  ;;  %v2771_v29 = vpop.permute.xlu1 %2770 }
0x1179   :  { %v2599_v44 = vmin.f32 %v2591_v6, 0.0  ;;  %v2565_v46 = vmul.f32 %v2560_v35, %v2537_v7  ;;  %vm2595_vm2 = vcmp.gt.f32.partialorder %v2591_v6, 0.0 }
0x117a   :  { %v2598_v22 = vmin.f32 %v2590_v40, 0.0  ;;  %v2564_v41 = vmul.f32 %v2555_v39, %v2536_v43  ;;  %vm2594_vm3 = vcmp.gt.f32.partialorder %v2590_v40, 0.0  ;;  %v2795_v43 = vpop.permute.xlu0 %2794 }
0x117b   :  { %v2604_v26 = vmul.f32 1.442695, %v2599_v44  ;;  %v2593_v51 = vadd.f32 %v2588_v38, %v2565_v46 }
0x117c   :  { %v2602_v47 = vmul.f32 1.442695, %v2598_v22  ;;  %v2592_v57 = vadd.f32 %v2583_v45, %v2564_v41 }
0x117d   :  { %5084 = vpow2.f32 %v2604_v26  ;;  %v2601_v49 = vmin.f32 %v2593_v51, 0.0  ;;  %vm2597_vm4 = vcmp.gt.f32.partialorder %v2593_v51, 0.0 }
0x117e   :  { %5086 = vpow2.f32 %v2602_v47  ;;  %v2600_v50 = vmin.f32 %v2592_v57, 0.0  ;;  %vm2596_vm5 = vcmp.gt.f32.partialorder %v2592_v57, 0.0 }
0x117f   :  { %v2608_v63 = vmul.f32 1.442695, %v2601_v49 }
0x1180   :  { %v2606_v12 = vmul.f32 1.442695, %v2600_v50 }
0x1181   :  { %5088 = vpow2.f32 %v2608_v63 }
0x1182   :  { %5090 = vpow2.f32 %v2606_v12 }
0x1187   :  { %v5085_v23 = vpop.eup %5084 }
0x1188   :  { %v5087_v27 = vpop.eup %5086  ;;  %v3219_v42 = vadd.f32 -1.0, %v5085_v23 }
0x1189   :  { %v3218_v48 = vadd.f32 -1.0, %v5087_v27 }
0x118a   :  { %v2615_v54 = vsel %vm2595_vm2, %v2591_v6, %v3219_v42  ;;  %v2800_v6 = vpop.permute.xlu1 %2799 }
0x118b   :  { %v5089_v60 = vpop.eup %5088  ;;  %v2614_v9 = vsel %vm2594_vm3, %v2590_v40, %v3218_v48 }
0x118c   :  { %v5091_v18 = vpop.eup %5090  ;;  %v4993_v52 = vpack.c.bf16 %v2615_v54, %v2614_v9  ;;  %v3221_v28 = vadd.f32 -1.0, %v5089_v60 }
0x118d   :  { %v3220_v53 = vadd.f32 -1.0, %v5091_v18 }
0x118e   :  { %4994 = vmatprep.subr.bf16.mxu1 %v4993_v52  ;;  %v2617_v56 = vsel %vm2597_vm4, %v2593_v51, %v3221_v28  ;;  %v3240_v28 = vld [vmem:[%s6083_s10 + $0x30] sm:$0xff] }
0x118f   :  { %4996 = vmatpush3.bf16.msra.mxu1 %v4993_v52  ;;  %v2616_v58 = vsel %vm2596_vm5, %v2592_v57, %v3220_v53  ;;  %v3239_v52 = vld [vmem:[%s6083_s10 + $0x28] sm:$0xff]  ;;  %v3241_v53 = vld [vmem:[%s6083_s10 + $0x38] sm:$0xff] }
0x1190   :  { %v4997_v61 = vpack.c.bf16 %v2617_v56, %v2616_v58 }
0x1192   :  { %4998 = vmatprep.subr.bf16.mxu1 %v4997_v61 }
0x1193   :  { %5000 = vmatpush3.bf16.msra.mxu1 %v4997_v61  ;;  %v2848_v61 = vpop.permute.xlu1 %2847 }
0x1196   :  { %4371 = vmatmul.mubr.msk.f32.vlgmr.msra.gmra.mrb[2].mxu1 %vm199_vm1, %v2619_v62  ;;  %v2843_v62 = vpop.permute.xlu0 %2842 }
0x1197   :  { %4373 = vmatprep.mubr.msk.f32.mxu1 %vm199_vm1, %v2620_v5  ;;  %v2858_v5 = vpop.permute.xlu1 %2857 }
0x119a   :  { %4374 = vmatmul.mubr.msk.f32.gmra.mrb[4].mxu1 %vm199_vm1, %v2621_v8  ;;  %v2853_v8 = vpop.permute.xlu0 %2852 }
0x119b   :  { %v2974_v10 = vpop.permute.xlu1 %2973 }
0x1269   :  { %v4372_v17 = vpop.f32.mrb[2].mxu1 }
0x126a   :  { %v2731_v19 = vadd.f32 %v4372_v17, %v2634_v11  ;;  %v2725_v20 = vpop.f32.mrb[3].mxu1  ;;  %v2969_v11 = vpop.permute.xlu0 %2968 }
0x126b   :  { %v2726_v24 = vadd.f32 %v2725_v20, %v2629_v13  ;;  %v3003_v13 = vpop.permute.xlu1 %3002 }
0x126c   :  { %v2745_v25 = vadd.f32 %v2731_v19, %v2615_v54 }
0x126d   :  { %v2744_v30 = vadd.f32 %v2726_v24, %v2614_v9  ;;  %v4375_v31 = vpop.f32.mrb[4].mxu1 }
0x126e   :  { %v2774_v33 = vmul.f32 %v2761_v15, %v2745_v25  ;;  %v2741_v34 = vadd.f32 %v4375_v31, %v2644_v14  ;;  %v2735_v35 = vpop.f32.mrb[5].mxu1  ;;  %v2998_v14 = vpop.permute.xlu0 %2997 }
0x126f   :  { %v2773_v36 = vmul.f32 %v2756_v21, %v2744_v30  ;;  %v2736_v37 = vadd.f32 %v2735_v35, %v2639_v16  ;;  %v2984_v17 = vpop.permute.xlu1 %2983 }
0x1270   :  { %v2803_v39 = vadd.f32 %v2790_v55, %v2774_v33  ;;  %v2747_v0 = vadd.f32 %v2741_v34, %v2617_v56  ;;  %v5173_v56 = vmov 0.0|0.0  }
0x1271   :  { %v2802_v1 = vadd.f32 %v2785_v59, %v2773_v36  ;;  %v2746_v2 = vadd.f32 %v2736_v37, %v2616_v58  ;;  %5009 = vmatprep.subr.bf16.mxu1 %v5173_v56  ;;  %v5175_v58 = vmov 0.0  }
0x1272   :  { %v2811_v3 = vmin.f32 %v2803_v39, 0.0  ;;  %v2776_v4 = vmul.f32 %v2771_v29, %v2747_v0  ;;  %vm2807_vm6 = vcmp.gt.f32.partialorder %v2803_v39, 0.0  ;;  %4398 = vmatprep.mubr.msk.f32.mxu1 %vm5174_vm10, %v5175_v58  ;;  %v2979_v24 = vpop.permute.xlu0 %2978 }
0x1273   :  { %v2810_v7 = vmin.f32 %v2802_v1, 0.0  ;;  %v2775_v40 = vmul.f32 %v2766_v32, %v2746_v2  ;;  %vm2806_vm7 = vcmp.gt.f32.partialorder %v2802_v1, 0.0  ;;  %v3013_v0 = vpop.permute.xlu1 %3012 }
0x1274   :  { %v2816_v44 = vmul.f32 1.442695, %v2811_v3  ;;  %v2805_v46 = vadd.f32 %v2800_v6, %v2776_v4 }
0x1275   :  { %v2814_v38 = vmul.f32 1.442695, %v2810_v7  ;;  %v2804_v22 = vadd.f32 %v2795_v43, %v2775_v40 }
0x1276   :  { %5092 = vpow2.f32 %v2816_v44  ;;  %v2813_v41 = vmin.f32 %v2805_v46, 0.0  ;;  %vm2809_vm8 = vcmp.gt.f32.partialorder %v2805_v46, 0.0  ;;  %v3008_v3 = vpop.permute.xlu0 %3007 }
0x1277   :  { %5094 = vpow2.f32 %v2814_v38  ;;  %v2812_v45 = vmin.f32 %v2804_v22, 0.0  ;;  %vm2808_vm9 = vcmp.gt.f32.partialorder %v2804_v22, 0.0 }
0x1278   :  { %v2820_v26 = vmul.f32 1.442695, %v2813_v41 }
0x1279   :  { %v2818_v51 = vmul.f32 1.442695, %v2812_v45 }
0x127a   :  { %5096 = vpow2.f32 %v2820_v26 }
0x127b   :  { %5098 = vpow2.f32 %v2818_v51 }
0x1280   :  { %v5093_v47 = vpop.eup %5092 }
0x1281   :  { %v5095_v57 = vpop.eup %5094  ;;  %v3235_v49 = vadd.f32 -1.0, %v5093_v47 }
0x1282   :  { %v3234_v50 = vadd.f32 -1.0, %v5095_v57 }
0x1283   :  { %v2827_v63 = vsel %vm2807_vm6, %v2803_v39, %v3235_v49 }
0x1284   :  { %v5097_v12 = vpop.eup %5096  ;;  %v2826_v23 = vsel %vm2806_vm7, %v2802_v1, %v3234_v50 }
0x1285   :  { %v5099_v27 = vpop.eup %5098  ;;  %v5001_v42 = vpack.c.bf16 %v2827_v63, %v2826_v23  ;;  %v3237_v48 = vadd.f32 -1.0, %v5097_v12 }
0x1286   :  { %v3236_v54 = vadd.f32 -1.0, %v5099_v27 }
0x1287   :  { %5002 = vmatprep.subr.bf16.mxu0 %v5001_v42  ;;  %v2829_v60 = vsel %vm2809_vm8, %v2805_v46, %v3237_v48  ;;  %v3043_v48 = vld [vmem:[%s6087_s14] sm:$0xff] }
0x1288   :  { %5004 = vmatpush3.bf16.msra.mxu0 %v5001_v42  ;;  %v2828_v9 = vsel %vm2808_vm9, %v2804_v22, %v3236_v54  ;;  %v3048_v54 = vpop.permute.xlu0 %3047 }
0x1289   :  { %v5005_v18 = vpack.c.bf16 %v2829_v60, %v2828_v9 }
0x128b   :  { %5006 = vmatprep.subr.bf16.mxu0 %v5005_v18 }
0x128c   :  { %5008 = vmatpush3.bf16.msra.mxu0 %v5005_v18 }
0x128f   :  { %4385 = vmatmul.mubr.msk.f32.vlgmr.msra.gmra.mrb[6].mxu0 %vm199_vm1, %v3239_v52 }
0x1290   :  { %4387 = vmatprep.mubr.msk.f32.mxu0 %vm199_vm1, %v3240_v28 }
0x1293   :  { %4388 = vmatmul.mubr.msk.f32.gmra.mrb[8].mxu0 %vm199_vm1, %v3241_v53 }
0x1362   :  { %v4386_v16 = vpop.f32.mrb[6].mxu0 }
0x1363   :  { %v2944_v15 = vadd.f32 %v4386_v16, %v2848_v61  ;;  %v2938_v21 = vpop.f32.mrb[7].mxu0 }
0x1364   :  { %v2939_v55 = vadd.f32 %v2938_v21, %v2843_v62 }
0x1365   :  { %v2958_v59 = vadd.f32 %v2944_v15, %v2827_v63 }
0x1366   :  { %v2957_v19 = vadd.f32 %v2939_v55, %v2826_v23  ;;  %v4389_v20 = vpop.f32.mrb[8].mxu0 }
0x1367   :  { %v2987_v25 = vmul.f32 %v2974_v10, %v2958_v59  ;;  %v2954_v29 = vadd.f32 %v4389_v20, %v2858_v5  ;;  %v2948_v30 = vpop.f32.mrb[9].mxu0 }
0x1368   :  { %v2986_v31 = vmul.f32 %v2969_v11, %v2957_v19  ;;  %v2949_v32 = vadd.f32 %v2948_v30, %v2853_v8 }
0x1369   :  { %v3016_v33 = vadd.f32 %v3003_v13, %v2987_v25  ;;  %v2960_v34 = vadd.f32 %v2954_v29, %v2829_v60 }
0x136a   :  { %v3015_v35 = vadd.f32 %v2998_v14, %v2986_v31  ;;  %v2959_v36 = vadd.f32 %v2949_v32, %v2828_v9 }
0x136b   :  { %v3024_v37 = vmin.f32 %v3016_v33, 0.0  ;;  %v2989_v39 = vmul.f32 %v2984_v17, %v2960_v34  ;;  %vm3020_vm11 = vcmp.gt.f32.partialorder %v3016_v33, 0.0 }
0x136c   :  { %v3023_v1 = vmin.f32 %v3015_v35, 0.0  ;;  %v2988_v2 = vmul.f32 %v2979_v24, %v2959_v36  ;;  %vm3019_vm12 = vcmp.gt.f32.partialorder %v3015_v35, 0.0 }
0x136d   :  { %v3029_v4 = vmul.f32 1.442695, %v3024_v37  ;;  %v3018_v6 = vadd.f32 %v3013_v0, %v2989_v39 }
0x136e   :  { %v3027_v7 = vmul.f32 1.442695, %v3023_v1  ;;  %v3017_v40 = vadd.f32 %v3008_v3, %v2988_v2 }
0x136f   :  { %5100 = vpow2.f32 %v3029_v4  ;;  %v3026_v43 = vmin.f32 %v3018_v6, 0.0  ;;  %vm3022_vm13 = vcmp.gt.f32.partialorder %v3018_v6, 0.0 }
0x1370   :  { %5102 = vpow2.f32 %v3027_v7  ;;  %v3025_v44 = vmin.f32 %v3017_v40, 0.0  ;;  %vm3021_vm14 = vcmp.gt.f32.partialorder %v3017_v40, 0.0 }
0x1371   :  { %v3033_v46 = vmul.f32 1.442695, %v3026_v43 }
0x1372   :  { %v3031_v38 = vmul.f32 1.442695, %v3025_v44 }
0x1373   :  { %5104 = vpow2.f32 %v3033_v46 }
0x1374   :  { %5106 = vpow2.f32 %v3031_v38 }
0x1379   :  { %v5101_v22 = vpop.eup %5100 }
0x137a   :  { %v5103_v41 = vpop.eup %5102  ;;  %v3259_v45 = vadd.f32 -1.0, %v5101_v22 }
0x137b   :  { %v3258_v26 = vadd.f32 -1.0, %v5103_v41 }
0x137c   :  { %v3040_v51 = vsel %vm3020_vm11, %v3016_v33, %v3259_v45 }
0x137d   :  { %v5105_v47 = vpop.eup %5104  ;;  %v3039_v57 = vsel %vm3019_vm12, %v3015_v35, %v3258_v26 }
0x137e   :  { %v5107_v49 = vpop.eup %5106  ;;  %v5010_v50 = vpack.c.bf16 %v3040_v51, %v3039_v57  ;;  %v3261_v63 = vadd.f32 -1.0, %v5105_v47 }
0x137f   :  { %v3260_v12 = vadd.f32 -1.0, %v5107_v49 }
0x1380   :  { %5011 = vmatpush3.bf16.msra.mxu1 %v5010_v50  ;;  %v3042_v23 = vsel %vm3022_vm13, %v3018_v6, %v3261_v63 }
0x1381   :  { %5012 = vmatprep.subr.bf16.mxu1 %v5173_v56  ;;  %v3041_v27 = vsel %vm3021_vm14, %v3017_v40, %v3260_v12 }
0x1382   :  { %v5013_v42 = vpack.c.bf16 %v3042_v23, %v3041_v27 }
0x1384   :  { %5014 = vmatpush3.bf16.msra.mxu1 %v5013_v42 }
0x1387   :  { %4399 = vmatmul.mubr.msk.f32.vlgmr.msra.gmra.mrb[6].mxu1 %vm199_vm1, %v3043_v48 }
0x145a   :  { %v3119_v60 = vpop.f32.mrb[6].mxu1 }
0x145b   :  { %v3120_v9 = vadd.f32 %v3119_v60, %v3048_v54  ;;  %v4400_v18 = vpop.f32.mrb[7].mxu1 }
0x145d   :  { %3123 = vst [vmem:[#allocation2] sm:$0xff] %v3120_v9 }
0x145e   :  { %5119 = shalt.err (!%p5116_p7)
}
0x145f   :  { %s5120_s14 = scalar_lea.hbm %s6089_s16, 128 }
0x1460   :  { %p5121_p8 = scmp.ne.s32.totalorder %s6089_s16, %s5120_s14  ;;  %p5124_p9 = scmp.lt.u32.totalorder %s5120_s14, %s6089_s16 }
0x1462   :  { %p5126_p10 = pnand %p5124_p9, %p5121_p8 }
0x1464   :  { %5129 = shalt.err (!%p5126_p10)
}
0x1465   :  { %3133 = dma.vmem_to_hbm [thread:$0]  %s3131_s3, 128, %s6089_s16, [#allocation3]  }
0x1466   :  { %5150 = dma.done.wait [#allocation3], 128  }
0x1467   :  { %5151 = vsyncadd [#allocation3], 4294967168 }
0x1468   :  { %3137 = vsyncpa [#allocation3], 1 }

</bundles_post_ra>
